<compile_context>
chip_gen: v7x
topology: tpu7x:2x2x1
jax: 0.10.0
libtpu: 0.0.40
codegen_flags: <defaults>
</compile_context>

<pallas_src>
import jax
import jax.numpy as jnp
from jax.experimental import pallas as pl
from jax.experimental.pallas import tpu as pltpu

LANE = 128  # TPU lane width


def _resblock_kernel(xpad_ref, w_ref, b_ref, o_ref):
    # xpad_ref: (1, Hp, Wp, Cp)   zero-padded input (spatial + channel pad)
    # w_ref:    (KH, KW*Cp, Cp)   conv weight with kw folded into contraction
    # b_ref:    (1, Cp)           conv bias
    # o_ref:    (1, tH, W, Cp)    output tile (lane-dense last dim)
    _, Hp, Wp, Cp = xpad_ref.shape
    _, tH, W, _ = o_ref.shape
    KH = w_ref.shape[0]
    KW = w_ref.shape[1] // Cp
    pad = (KH - 1) // 2  # 'same' conv -- required for the residual add

    i = pl.program_id(1)
    row0 = pl.multiple_of(i * tH, tH)

    # Bias folded into the accumulator init (saves one VPU pass over the tile).
    acc = jnp.broadcast_to(b_ref[...].astype(jnp.float32), (tH, W, Cp))

    res_rows = None
    for kh in range(KH):  # 3 MXU pushes total, K = KW*Cp each.
        # (tH, Wp, Cp) slab of padded rows, read in native dtype (no upcast).
        rows = xpad_ref[0, pl.ds(row0 + kh, tH), :, :]
        if kh == pad:
            res_rows = rows  # reused below for the residual branch (no re-read)
        # Fold the KW taps into one (tH, W, KW*Cp) slab -> single dot per kh.
        slab = jnp.concatenate(
            [rows[:, kw:kw + W, :] for kw in range(KW)], axis=-1)
        acc = acc + jax.lax.dot_general(
            slab, w_ref[kh],
            dimension_numbers=(((2,), (0,)), ((), ())),
            preferred_element_type=jnp.float32,
        )

    # Residual from the interior of the padded block, ReLU, single final cast.
    res = res_rows[:, pad:pad + W, :].astype(jnp.float32)
    out = jnp.maximum(acc + res, 0.0)
    o_ref[...] = out[None].astype(o_ref.dtype)


def resblock_forward(x_nchw, w_hwio, bias, *, padding=1, tile_h=8):
    """x_nchw: (B, C, H, W) like PyTorch. w_hwio: (KH, KW, Cin, Cout). Returns NCHW."""
    B, C, H, W = x_nchw.shape
    KH, KW, Cin, Cout = w_hwio.shape
    assert Cin == C and Cout == C
    # The residual add requires 'same' spatial shape (as in the PyTorch module).
    assert KH == KW and padding == (KH - 1) // 2

    Cp = ((C + LANE - 1) // LANE) * LANE          # lane-dense channel count
    tH = tile_h if H % tile_h == 0 else H          # H tile size (grid axis 1)
    Hp, Wp = H + 2 * padding, W + 2 * padding

    # Boundary-only layout glue (NCHW -> padded channels-last). Kept only to
    # match the PyTorch interface.
    x_nhwc = jnp.transpose(x_nchw, (0, 2, 3, 1))
    xpad = jnp.pad(
        x_nhwc,
        ((0, 0), (padding, padding), (padding, padding), (0, Cp - C)))
    w_folded = jnp.pad(
        w_hwio, ((0, 0), (0, 0), (0, Cp - C), (0, Cp - C))
    ).reshape(KH, KW * Cp, Cp)
    b_p = jnp.pad(bias, (0, Cp - C)).reshape(1, Cp)

    out_nhwc = pl.pallas_call(
        _resblock_kernel,
        out_shape=jax.ShapeDtypeStruct((B, H, W, Cp), x_nchw.dtype),
        grid_spec=pltpu.PrefetchScalarGridSpec(
            num_scalar_prefetch=0,
            grid=(B, H // tH),
            in_specs=[
                # Padded image block index depends only on b, so it is fetched
                # once per batch and stays resident; the kernel slices the
                # tH + KH - 1 halo rows it needs with pl.ds. (For very large H
                # this input would also be halo-tiled along H.)
                pl.BlockSpec((1, Hp, Wp, Cp), lambda b, i: (b, 0, 0, 0)),
                pl.BlockSpec((KH, KW * Cp, Cp), lambda b, i: (0, 0, 0)),
                pl.BlockSpec((1, Cp), lambda b, i: (0, 0)),
            ],
            out_specs=pl.BlockSpec((1, tH, W, Cp), lambda b, i: (b, i, 0, 0)),
        ),
        compiler_params=pltpu.CompilerParams(
            dimension_semantics=("parallel", "parallel"),
            vmem_limit_bytes=32 * 1024 * 1024,
        ),
    )(xpad, w_folded, b_p)

    return jnp.transpose(out_nhwc[..., :C], (0, 3, 1, 2))  # back to NCHW


def _reference(x_nchw, w_hwio, bias, *, padding=1):
    # Pure-JAX reference (matches PyTorch Conv2d + residual + ReLU).
    w_oihw = jnp.transpose(w_hwio, (3, 2, 0, 1))  # (Cout, Cin, KH, KW)
    y = jax.lax.conv_general_dilated(
        x_nchw.astype(jnp.float32), w_oihw.astype(jnp.float32),
        window_strides=(1, 1),
        padding=[(padding, padding), (padding, padding)],
        dimension_numbers=("NCHW", "OIHW", "NCHW"),
    )
    y = y + bias.astype(jnp.float32)[None, :, None, None]
    return jnp.maximum(y + x_nchw.astype(jnp.float32), 0.0)


if __name__ == "__main__":
    B, C, H, W = 2, 4, 16, 16
    KH = KW = 3

    key = jax.random.PRNGKey(0)
    kx, kw_key, kb_key = jax.random.split(key, 3)

    x = jax.random.normal(kx, (B, C, H, W), dtype=jnp.float32)
    # Deterministic synthetic "Conv2d" parameters (HWIO layout).
    fan_in = C * KH * KW
    bound = 1.0 / (fan_in ** 0.5)
    w = jax.random.uniform(kw_key, (KH, KW, C, C), jnp.float32, -bound, bound)
    b = jax.random.uniform(kb_key, (C,), jnp.float32, -bound, bound)

    out = resblock_forward(x, w, b)
    out = jax.block_until_ready(out)

    ref = _reference(x, w, b)
    assert out.shape == (B, C, H, W)
    assert jnp.allclose(out, ref.astype(out.dtype), atol=1e-4, rtol=1e-4)

    print("KERNEL_OK")
</pallas_src>

<mosaic_0001>
module attributes {stable_mosaic.version = 11 : i64} {
  func.func @_resblock_kernel(%arg0: i32, %arg1: i32, %arg2: memref<1x18x18x128xf32, #tpu.memory_space<vmem>>, %arg3: memref<3x384x128xf32, #tpu.memory_space<vmem>>, %arg4: memref<1x128xf32, #tpu.memory_space<vmem>>, %arg5: memref<1x8x16x128xf32, #tpu.memory_space<vmem>>) attributes {dimension_semantics = [#tpu.dimension_semantics<parallel>, #tpu.dimension_semantics<parallel>], iteration_bounds = array<i64: 2, 2>, scalar_prefetch = 0 : i64, scratch_operands = 0 : i64, tpu.core_type = #tpu.core_type<tc>, window_params = [{transform_indices = @transform_0, window_bounds = array<i64: 1, 18, 18, 128>}, {pipeline_mode = #tpu.pipeline_mode<synchronous>, transform_indices = @transform_1, window_bounds = array<i64: 3, 384, 128>}, {pipeline_mode = #tpu.pipeline_mode<synchronous>, transform_indices = @transform_2, window_bounds = array<i64: 1, 128>}, {transform_indices = @transform_3, window_bounds = array<i64: 1, 8, 16, 128>}]} {
    %c8_i32 = arith.constant 8 : i32
    %0 = arith.muli %arg1, %c8_i32 : i32
    %1 = tpu.assume_multiple %0, 8 : i32
    %c0 = arith.constant 0 : index
    %c0_0 = arith.constant 0 : index
    %2 = vector.load %arg4[%c0, %c0_0] : memref<1x128xf32, #tpu.memory_space<vmem>>, vector<1x128xf32>
    %3 = vector.shape_cast %2 : vector<1x128xf32> to vector<1x1x128xf32>
    %4 = vector.broadcast %3 : vector<1x1x128xf32> to vector<8x16x128xf32>
    %c0_i32 = arith.constant 0 : i32
    %5 = arith.addi %1, %c0_i32 : i32
    %c0_1 = arith.constant 0 : index
    %6 = arith.index_cast %5 : i32 to index
    %c0_2 = arith.constant 0 : index
    %c0_3 = arith.constant 0 : index
    %7 = vector.load %arg2[%c0_1, %6, %c0_2, %c0_3] : memref<1x18x18x128xf32, #tpu.memory_space<vmem>>, vector<1x8x18x128xf32>
    %8 = vector.shape_cast %7 : vector<1x8x18x128xf32> to vector<8x18x128xf32>
    %9 = vector.extract_strided_slice %8 {offsets = [0, 0, 0], sizes = [8, 16, 128], strides = [1, 1, 1]} : vector<8x18x128xf32> to vector<8x16x128xf32>
    %10 = vector.extract_strided_slice %8 {offsets = [0, 1, 0], sizes = [8, 16, 128], strides = [1, 1, 1]} : vector<8x18x128xf32> to vector<8x16x128xf32>
    %11 = vector.extract_strided_slice %8 {offsets = [0, 2, 0], sizes = [8, 16, 128], strides = [1, 1, 1]} : vector<8x18x128xf32> to vector<8x16x128xf32>
    %12 = tpu.concatenate %9, %10, %11 in 2 : vector<8x16x128xf32>, vector<8x16x128xf32>, vector<8x16x128xf32> -> vector<8x16x384xf32>
    %c0_4 = arith.constant 0 : index
    %c0_5 = arith.constant 0 : index
    %c0_6 = arith.constant 0 : index
    %13 = vector.load %arg3[%c0_4, %c0_5, %c0_6] : memref<3x384x128xf32, #tpu.memory_space<vmem>>, vector<1x384x128xf32>
    %14 = vector.shape_cast %13 : vector<1x384x128xf32> to vector<384x128xf32>
    %cst = arith.constant dense<0.000000e+00> : vector<8x16x128xf32>
    %15 = tpu.matmul %12, %14, %cst {dimension_numbers = #tpu.dot_dimension_numbers<[2], [0], [0, 1], [1], [0, 0, 0, 1, 1, 1], [], []>} : vector<8x16x384xf32>, vector<384x128xf32>, vector<8x16x128xf32> -> vector<8x16x128xf32>
    %16 = arith.addf %4, %15 : vector<8x16x128xf32>
    %c1_i32 = arith.constant 1 : i32
    %17 = arith.addi %1, %c1_i32 : i32
    %c0_7 = arith.constant 0 : index
    %18 = arith.index_cast %17 : i32 to index
    %c0_8 = arith.constant 0 : index
    %c0_9 = arith.constant 0 : index
    %19 = vector.load %arg2[%c0_7, %18, %c0_8, %c0_9] : memref<1x18x18x128xf32, #tpu.memory_space<vmem>>, vector<1x8x18x128xf32>
    %20 = vector.shape_cast %19 : vector<1x8x18x128xf32> to vector<8x18x128xf32>
    %21 = vector.extract_strided_slice %20 {offsets = [0, 0, 0], sizes = [8, 16, 128], strides = [1, 1, 1]} : vector<8x18x128xf32> to vector<8x16x128xf32>
    %22 = vector.extract_strided_slice %20 {offsets = [0, 1, 0], sizes = [8, 16, 128], strides = [1, 1, 1]} : vector<8x18x128xf32> to vector<8x16x128xf32>
    %23 = vector.extract_strided_slice %20 {offsets = [0, 2, 0], sizes = [8, 16, 128], strides = [1, 1, 1]} : vector<8x18x128xf32> to vector<8x16x128xf32>
    %24 = tpu.concatenate %21, %22, %23 in 2 : vector<8x16x128xf32>, vector<8x16x128xf32>, vector<8x16x128xf32> -> vector<8x16x384xf32>
    %c1 = arith.constant 1 : index
    %c0_10 = arith.constant 0 : index
    %c0_11 = arith.constant 0 : index
    %25 = vector.load %arg3[%c1, %c0_10, %c0_11] : memref<3x384x128xf32, #tpu.memory_space<vmem>>, vector<1x384x128xf32>
    %26 = vector.shape_cast %25 : vector<1x384x128xf32> to vector<384x128xf32>
    %cst_12 = arith.constant dense<0.000000e+00> : vector<8x16x128xf32>
    %27 = tpu.matmul %24, %26, %cst_12 {dimension_numbers = #tpu.dot_dimension_numbers<[2], [0], [0, 1], [1], [0, 0, 0, 1, 1, 1], [], []>} : vector<8x16x384xf32>, vector<384x128xf32>, vector<8x16x128xf32> -> vector<8x16x128xf32>
    %28 = arith.addf %16, %27 : vector<8x16x128xf32>
    %c2_i32 = arith.constant 2 : i32
    %29 = arith.addi %1, %c2_i32 : i32
    %c0_13 = arith.constant 0 : index
    %30 = arith.index_cast %29 : i32 to index
    %c0_14 = arith.constant 0 : index
    %c0_15 = arith.constant 0 : index
    %31 = vector.load %arg2[%c0_13, %30, %c0_14, %c0_15] : memref<1x18x18x128xf32, #tpu.memory_space<vmem>>, vector<1x8x18x128xf32>
    %32 = vector.shape_cast %31 : vector<1x8x18x128xf32> to vector<8x18x128xf32>
    %33 = vector.extract_strided_slice %32 {offsets = [0, 0, 0], sizes = [8, 16, 128], strides = [1, 1, 1]} : vector<8x18x128xf32> to vector<8x16x128xf32>
    %34 = vector.extract_strided_slice %32 {offsets = [0, 1, 0], sizes = [8, 16, 128], strides = [1, 1, 1]} : vector<8x18x128xf32> to vector<8x16x128xf32>
    %35 = vector.extract_strided_slice %32 {offsets = [0, 2, 0], sizes = [8, 16, 128], strides = [1, 1, 1]} : vector<8x18x128xf32> to vector<8x16x128xf32>
    %36 = tpu.concatenate %33, %34, %35 in 2 : vector<8x16x128xf32>, vector<8x16x128xf32>, vector<8x16x128xf32> -> vector<8x16x384xf32>
    %c2 = arith.constant 2 : index
    %c0_16 = arith.constant 0 : index
    %c0_17 = arith.constant 0 : index
    %37 = vector.load %arg3[%c2, %c0_16, %c0_17] : memref<3x384x128xf32, #tpu.memory_space<vmem>>, vector<1x384x128xf32>
    %38 = vector.shape_cast %37 : vector<1x384x128xf32> to vector<384x128xf32>
    %cst_18 = arith.constant dense<0.000000e+00> : vector<8x16x128xf32>
    %39 = tpu.matmul %36, %38, %cst_18 {dimension_numbers = #tpu.dot_dimension_numbers<[2], [0], [0, 1], [1], [0, 0, 0, 1, 1, 1], [], []>} : vector<8x16x384xf32>, vector<384x128xf32>, vector<8x16x128xf32> -> vector<8x16x128xf32>
    %40 = arith.addf %28, %39 : vector<8x16x128xf32>
    %41 = vector.extract_strided_slice %20 {offsets = [0, 1, 0], sizes = [8, 16, 128], strides = [1, 1, 1]} : vector<8x18x128xf32> to vector<8x16x128xf32>
    %42 = arith.addf %40, %41 : vector<8x16x128xf32>
    %cst_19 = arith.constant 0.000000e+00 : f32
    %43 = vector.broadcast %cst_19 : f32 to vector<8x16x128xf32>
    %44 = arith.maximumf %42, %43 : vector<8x16x128xf32>
    %45 = vector.shape_cast %44 : vector<8x16x128xf32> to vector<1x8x16x128xf32>
    %c0_20 = arith.constant 0 : index
    %c0_21 = arith.constant 0 : index
    %c0_22 = arith.constant 0 : index
    %c0_23 = arith.constant 0 : index
    %46 = vector.load %arg5[%c0_20, %c0_21, %c0_22, %c0_23] : memref<1x8x16x128xf32, #tpu.memory_space<vmem>>, vector<1x8x16x128xf32>
    tpu.vector_store %arg5[%c0_20, %c0_21, %c0_22, %c0_23], %45 {strides = array<i32>} : memref<1x8x16x128xf32, #tpu.memory_space<vmem>>, vector<1x8x16x128xf32>,
    return
  }
  func.func @transform_0(%arg0: i32, %arg1: i32) -> (i32, i32, i32, i32) {
    %c0_i32 = arith.constant 0 : i32
    %c0_i32_0 = arith.constant 0 : i32
    %c0_i32_1 = arith.constant 0 : i32
    %c0_i32_2 = arith.constant 0 : i32
    return %arg0, %c0_i32, %c0_i32_0, %c0_i32_1 : i32, i32, i32, i32
  }
  func.func @transform_1(%arg0: i32, %arg1: i32) -> (i32, i32, i32) {
    %c0_i32 = arith.constant 0 : i32
    %c0_i32_0 = arith.constant 0 : i32
    %c0_i32_1 = arith.constant 0 : i32
    %c0_i32_2 = arith.constant 0 : i32
    return %c0_i32, %c0_i32_0, %c0_i32_1 : i32, i32, i32
  }
  func.func @transform_2(%arg0: i32, %arg1: i32) -> (i32, i32) {
    %c0_i32 = arith.constant 0 : i32
    %c0_i32_0 = arith.constant 0 : i32
    %c0_i32_1 = arith.constant 0 : i32
    return %c0_i32, %c0_i32_0 : i32, i32
  }
  func.func @transform_3(%arg0: i32, %arg1: i32) -> (i32, i32, i32, i32) {
    %c0_i32 = arith.constant 0 : i32
    %c0_i32_0 = arith.constant 0 : i32
    %c0_i32_1 = arith.constant 0 : i32
    return %arg0, %arg1, %c0_i32, %c0_i32_0 : i32, i32, i32, i32
  }
}

</mosaic_0001>

<bundles_post_ra>
// kernel: tpu_custom_call.1
= control target key start
LH: loop header
LB: loop body
LE: loop exit
PB: predicated region body
PF: predicated region fallthrough
CT: control target
= control target key end

     0   :  { %8 = vsyncpa [#allocation3], 0  ;;  %s4639_s0 = inlined_call_operand.vmem [shape: f32[2,18,18,128], index: 0, kind: input, shape index: {}]   ;;  %s4640_s1 = inlined_call_operand.vmem [shape: f32[3,384,128], index: 1, kind: input, shape index: {}]   ;;  %s4641_s2 = inlined_call_operand.vmem [shape: f32[1,128], index: 2, kind: input, shape index: {}]   ;;  %s4642_s3 = inlined_call_operand.hbm [shape: f32[2,16,16,128], index: 3, kind: output, shape index: {}]  }
   0x1   :  { %10 = vsyncpa [#allocation3 + $0x1], 0  ;;  %s3065_s12 = smov 0   ;;  %s3067_s13 = smov 0  }
   0x2   :  { %s3069_s14 = smov 0   ;;  %s3071_s15 = smov 0  }
   0x3   :  { %s3073_s16 = smov 0   ;;  %s3075_s17 = smov 0  }
   0x4   :  { %s3077_s18 = smov 0   ;;  %s3079_s19 = smov 0  }
   0x5 LB: > { %s1897_s20 = sadd.s32 4294967295, %s3040_s19   ;;  %s1898_s21 = sadd.s32 4294967294, %s3040_s19   ;;  %s3040_s19 = sphi %s3079_s19, %s16_s19   ;;  %s3036_s18 = sphi %s3077_s18, %s4771_s18   ;;  %s3032_s17 = sphi %s3075_s17, %s4770_s17   ;;  %s3028_s16 = sphi %s3073_s16, %s4769_s16   ;;  %s3024_s15 = sphi %s3071_s15, %s4768_s15   ;;  %s3020_s14 = sphi %s3069_s14, %s4767_s14   ;;  %s3016_s13 = sphi %s3067_s13, %s4766_s13   ;;  %s3012_s12 = sphi %s3065_s12, %s4765_s12  }
   0x6   : > { %s25_s22 = sadd.s32 1, %s3032_s17  ;;  %s28_s23 = sadd.s32 1, %s3036_s18 }
   0x7   : > { %p26_p0 = scmp.ge.s32.totalorder %s25_s22, 2  ;;  %p115_p1 = scmp.ne.s32.totalorder %s3020_s14, %s3016_s13 }
   0x8   : > { %p116_p2 = scmp.eq.s32.totalorder %s1897_s20, 3  ;;  %p121_p5 = scmp.ne.s32.totalorder %s3016_s13, %s3012_s12 }
   0x9   : > { %s4773_s22 = smov (%p26_p0, %s25_s22), 0  ;;  %s4775_s23 = smov (!%p26_p0, %s28_s23), %s3036_s18 }
   0xa   : > { %s101_s24 = ssub.s32 %s3032_s17, %s4773_s22  ;;  %p3116_p3 = por %p116_p2, %p115_p1 }
   0xb   : > { %p30_p4 = scmp.ge.s32.totalorder %s4775_s23, 2  ;;  %p122_p6 = scmp.eq.s32.totalorder %s1898_s21, 3 }
   0xc   : > { %p1901_p7 = scmp.ge.s32.totalorder %s3040_s19, 1  ;;  %p154_p9 = scmp.lt.s32.totalorder %s3040_s19, 5 }
   0xd   : > { %s4777_s23 = smov (%p30_p4, %s4775_s23), 0  ;;  %p3125_p8 = por %p122_p6, %p121_p5 }
   0xe   : > { %s100_s27 = ssub.s32 %s3036_s18, %s4777_s23  ;;  %s105_s28 = sadd.s32 1, %s3020_s14 }
   0xf   : > { %s102_s29 = sor.u32 %s101_s24, %s100_s27  ;;  %p155_p10 = pnand %p1901_p7, %p154_p9 }
  0x10   : > { %p103_p11 = scmp.eq.s32.totalorder %s102_s29, 0 }
  0x11   : > { %158 = sbr.rel (%p155_p10) target bundleno = 438 (0x1b6), region = 32 }
  0x12   : > { %s3134_s30 = scalar_select %p103_p11, %s3020_s14, %s105_s28  }
  0x18   : > { %v372_v0 = vld [vmem:[%s4640_s1 + $0x80] sm:$0xff]  ;;  %v373_v1 = vld [vmem:[%s4640_s1 + $0x88] sm:$0xff]  ;;  %p178_p12 = scmp.lt.s32.totalorder %s3028_s16, 1  ;;  %v374_v9 = vld [vmem:[%s4640_s1 + $0x90] sm:$0xff]  ;;  %vm242_vm0 = vcmask 1046528   ;;  %vm299_vm1 = vcmask 1045504  }
  0x19   : > { %v388_v2 = vld [vmem:[%s4640_s1 + $0x100] sm:$0xff]  ;;  %v2567_v3 = vpack.c.bf16 %v373_v1, %v372_v0  ;;  %v389_v4 = vld [vmem:[%s4640_s1 + $0x108] sm:$0xff]  ;;  %v375_v10 = vld [vmem:[%s4640_s1 + $0x98] sm:$0xff]  ;;  %s2062_s27 = sshll.u32 %s3024_s15, 4  ;;  %s2058_s28 = sshll.u32 %s3028_s16, 5 }
  0x1a   : > { %v356_v5 = vld [vmem:[%s4640_s1] sm:$0xff]  ;;  %v357_v6 = vld [vmem:[%s4640_s1 + $0x8] sm:$0xff]  ;;  %v2599_v7 = vpack.c.bf16 %v389_v4, %v388_v2  ;;  %v390_v11 = vld [vmem:[%s4640_s1 + $0x110] sm:$0xff]  ;;  %s3165_s8 = scalar_select %p178_p12, %s3028_s16, 1  ;;  %v2571_v12 = vpack.c.bf16 %v375_v10, %v374_v9 }
  0x1b   : > { %v2569_v8 = vpack.c.bf16 %v357_v6, %v356_v5  ;;  %2568 = vmatprep.subr.bf16.mxu0 %v2567_v3  ;;  %v391_v13 = vld [vmem:[%s4640_s1 + $0x118] sm:$0xff]  ;;  %v358_v14 = vld [vmem:[%s4640_s1 + $0x10] sm:$0xff]  ;;  %v376_v18 = vld [vmem:[%s4640_s1 + $0xa0] sm:$0xff]  ;;  %s3042_s20 = smov [#allocation2]  }
  0x1c   : > { %v359_v15 = vld [vmem:[%s4640_s1 + $0x18] sm:$0xff]  ;;  %2600 = vmatprep.subr.bf16.mxu1 %v2599_v7  ;;  %v2603_v16 = vpack.c.bf16 %v391_v13, %v390_v11  ;;  %v377_v19 = vld [vmem:[%s4640_s1 + $0xa8] sm:$0xff]  ;;  %v392_v20 = vld [vmem:[%s4640_s1 + $0x120] sm:$0xff]  ;;  %s2871_s4 = smul.u32 432, %s3165_s8 }
  0x1d   : > { %2570 = vmatpush3.bf16.msra.mxu0 %v2569_v8  ;;  %v2573_v17 = vpack.c.bf16 %v359_v15, %v358_v14  ;;  %2602 = vmatpush3.bf16.msra.mxu1 %v2599_v7  ;;  %v2575_v21 = vpack.c.bf16 %v377_v19, %v376_v18  ;;  %v393_v22 = vld [vmem:[%s4640_s1 + $0x128] sm:$0xff]  ;;  %v360_v23 = vld [vmem:[%s4640_s1 + $0x20] sm:$0xff]  ;;  %v378_v26 = vld [vmem:[%s4640_s1 + $0xb0] sm:$0xff]  ;;  %s1906_s8 = smul.u32 192, %s3024_s15  ;;  %s1808_s15 = sadd.s32 %s2062_s27, %s2058_s28 }
  0x1e   : > { %2572 = vmatprep.subr.bf16.mxu0 %v2571_v12  ;;  %v361_v24 = vld [vmem:[%s4640_s1 + $0x28] sm:$0xff]  ;;  %2604 = vmatprep.subr.bf16.mxu1 %v2603_v16  ;;  %v2607_v25 = vpack.c.bf16 %v393_v22, %v392_v20  ;;  %v379_v27 = vld [vmem:[%s4640_s1 + $0xb8] sm:$0xff]  ;;  %v394_v28 = vld [vmem:[%s4640_s1 + $0x130] sm:$0xff]  ;;  %s182_s7 = scalar_lea.vmem %s4639_s0, %s2871_s4  ;;  %s2059_s16 = sshll.u32 %s1808_s15, 7 }
  0x1f   : > { %v395_v29 = vld [vmem:[%s4640_s1 + $0x138] sm:$0xff]  ;;  %v2577_v30 = vpack.c.bf16 %v361_v24, %v360_v23  ;;  %v2579_v31 = vpack.c.bf16 %v379_v27, %v378_v26  ;;  %v362_v32 = vld [vmem:[%s4640_s1 + $0x30] sm:$0xff]  ;;  %v380_v35 = vld [vmem:[%s4640_s1 + $0xc0] sm:$0xff]  ;;  %s3241_s9 = scalar_lea.vmem %s182_s7, %s1906_s8  ;;  %s175_s8 = sand.u32 1, %s3016_s13  }
  0x20   : > { %v363_v33 = vld [vmem:[%s4640_s1 + $0x38] sm:$0xff]  ;;  %v2611_v34 = vpack.c.bf16 %v395_v29, %v394_v28  ;;  %v381_v36 = vld [vmem:[%s4640_s1 + $0xc8] sm:$0xff]  ;;  %v396_v37 = vld [vmem:[%s4640_s1 + $0x140] sm:$0xff]  ;;  %s1902_s7 = sshll.u32 %s175_s8, 7  ;;  %s4577_s6 = scalar_lea.hbm %s4642_s3, %s2059_s16 }
  0x21   : > { %2574 = vmatpush3.bf16.msra.mxu0 %v2573_v17  ;;  %2606 = vmatpush3.bf16.msra.mxu1 %v2603_v16  ;;  %v397_v38 = vld [vmem:[%s4640_s1 + $0x148] sm:$0xff]  ;;  %v2581_v39 = vpack.c.bf16 %v363_v33, %v362_v32  ;;  %v364_v40 = vld [vmem:[%s4640_s1 + $0x40] sm:$0xff]  ;;  %v2583_v41 = vpack.c.bf16 %v381_v36, %v380_v35  ;;  %v382_v43 = vld [vmem:[%s4640_s1 + $0xd0] sm:$0xff]  ;;  %s4539_s24 = scalar_lea.vmem [#allocation2], %s1902_s7  ;;  %s4587_s10 = scalar_lea.sflag [#allocation3], %s175_s8 }
  0x22   : > { %2576 = vmatprep.subr.bf16.mxu0 %v2575_v21  ;;  %2608 = vmatprep.subr.bf16.mxu1 %v2607_v25  ;;  %v365_v42 = vld [vmem:[%s4640_s1 + $0x48] sm:$0xff]  ;;  %v383_v44 = vld [vmem:[%s4640_s1 + $0xd8] sm:$0xff]  ;;  %v2615_v45 = vpack.c.bf16 %v397_v38, %v396_v37  ;;  %v398_v46 = vld [vmem:[%s4640_s1 + $0x150] sm:$0xff]  ;;  %s1811_s4 = sshll.u32 %s4539_s24, 4  ;;  %s4579_s4 = int_to_ptr.vmem [resolvable:$true] %s1811_s4 }
  0x23   : > { %v399_v47 = vld [vmem:[%s4640_s1 + $0x158] sm:$0xff]  ;;  %v2585_v48 = vpack.c.bf16 %v365_v42, %v364_v40  ;;  %v2587_v49 = vpack.c.bf16 %v383_v44, %v382_v43  ;;  %v3250_v50 = vld [vmem:[%s3241_s9] sm:$0xff]  ;;  %v3253_v51 = vld [vmem:[%s3241_s9 + $0x8] sm:$0xff]  ;;  %s2946_s11 = scalar_lea.vmem %s4579_s4, 2048 }
  0x24   : > { %v366_v52 = vld [vmem:[%s4640_s1 + $0x50] sm:$0xff]  ;;  %v367_v53 = vld [vmem:[%s4640_s1 + $0x58] sm:$0xff]  ;;  %v243_v54 = vrot.slane %v3250_v50, 1  ;;  %v244_v55 = vrot.slane %v3253_v51, 1  ;;  %v300_v56 = vrot.slane %v3250_v50, 2  ;;  %v301_v57 = vrot.slane %v3253_v51, 2  ;;  %p2947_p13 = scmp.ne.s32.totalorder %s4579_s4, %s2946_s11 }
  0x25   : > { %2578 = vmatpush3.bf16.msra.mxu0 %v2577_v30  ;;  %2610 = vmatpush3.bf16.msra.mxu1 %v2607_v25  ;;  %v2619_v58 = vpack.c.bf16 %v399_v47, %v398_v46  ;;  %v384_v59 = vld [vmem:[%s4640_s1 + $0xe0] sm:$0xff]  ;;  %v385_v60 = vld [vmem:[%s4640_s1 + $0xe8] sm:$0xff]  ;;  %v2589_v2 = vpack.c.bf16 %v367_v53, %v366_v52  ;;  %v386_v4 = vld [vmem:[%s4640_s1 + $0xf0] sm:$0xff] }
  0x26   : > { %2580 = vmatprep.subr.bf16.mxu0 %v2579_v31  ;;  %2612 = vmatprep.subr.bf16.mxu1 %v2611_v34  ;;  %v400_v61 = vld [vmem:[%s4640_s1 + $0x160] sm:$0xff]  ;;  %v401_v62 = vld [vmem:[%s4640_s1 + $0x168] sm:$0xff]  ;;  %v245_v0 = vsel %vm242_vm0, %v243_v54, %v244_v55  ;;  %v302_v1 = vsel %vm299_vm1, %v300_v56, %v301_v57  ;;  %v387_v5 = vld [vmem:[%s4640_s1 + $0xf8] sm:$0xff]  ;;  %v2591_v6 = vpack.c.bf16 %v385_v60, %v384_v59  ;;  %p2948_p0 = pnand %p2947_p13, %p3116_p3 }
  0x27   : > { %v368_v63 = vld [vmem:[%s4640_s1 + $0x60] sm:$0xff]  ;;  %v369_v3 = vld [vmem:[%s4640_s1 + $0x68] sm:$0xff]  ;;  %468 = vmatprep.mubr.f32.mxu0 %v245_v0  ;;  %v402_v7 = vld [vmem:[%s4640_s1 + $0x170] sm:$0xff]  ;;  %v2623_v10 = vpack.c.bf16 %v401_v62, %v400_v61  ;;  %2431 = vmatprep.mubr.f32.mxu1 %v302_v1  ;;  %v2595_v22 = vpack.c.bf16 %v387_v5, %v386_v4 }
  0x28   : > { %v403_v8 = vld [vmem:[%s4640_s1 + $0x178] sm:$0xff]  ;;  %v196_v9 = vld [vmem:[%s3241_s9 + $0x10] sm:$0x3]  ;;  %v3313_v13 = vld [vmem:[%s4640_s1 + $0x200] sm:$0xff]  ;;  %v2593_v17 = vpack.c.bf16 %v369_v3, %v368_v63  ;;  %p2949_p1 = pneg %p2948_p0 }
  0x29   : > { %2582 = vmatpush3.bf16.msra.mxu0 %v2581_v39  ;;  %2614 = vmatpush3.bf16.msra.mxu1 %v2611_v34  ;;  %v3303_v11 = vld [vmem:[%s4640_s1 + $0x70] sm:$0xff]  ;;  %v3308_v12 = vld [vmem:[%s4640_s1 + $0x78] sm:$0xff]  ;;  %v3318_v14 = vld [vmem:[%s4640_s1 + $0x208] sm:$0xff]  ;;  %v303_v18 = vrot.slane %v196_v9, 2  ;;  %v2627_v26 = vpack.c.bf16 %v403_v8, %v402_v7  ;;  %v246_v28 = vrot.slane %v196_v9, 1 }
  0x2a   : > { %2584 = vmatprep.subr.bf16.mxu0 %v2583_v41  ;;  %2616 = vmatprep.subr.bf16.mxu1 %v2615_v45  ;;  %v3323_v15 = vld [vmem:[%s4640_s1 + $0x380] sm:$0xff]  ;;  %v3326_v16 = vld [vmem:[%s3241_s9 + $0x18] sm:$0xff]  ;;  %v3331_v19 = vld [vmem:[%s4640_s1 + $0x388] sm:$0xff]  ;;  %v2597_v32 = vpack.c.bf16 %v3308_v12, %v3303_v11  ;;  %v2631_v33 = vpack.c.bf16 %v3318_v14, %v3313_v13 }
  0x2b   : > { %4684 = vst [vmem:[#allocation5_spill] sm:$0xff] %v3326_v16  ;;  %v3334_v20 = vld [vmem:[%s3241_s9 + $0x20] sm:$0xff]  ;;  %v3337_v21 = vld [vmem:[%s3241_s9 + $0x28] sm:$0x3]  ;;  %v305_v29 = vrot.slane %v3326_v16, 2  ;;  %v3363_v30 = vld [vmem:[%s4640_s1 + $0x210] sm:$0xff]  ;;  %v3388_v39 = vsel %vm299_vm1, %v301_v57, %v303_v18  ;;  %v2695_v40 = vpack.c.bf16 %v3331_v19, %v3323_v15  ;;  %v247_v56 = vsel %vm242_vm0, %v244_v55, %v246_v28 }
  0x2c   : > { %4685 = vst [vmem:[#allocation6_spill] sm:$0xff] %v3334_v20  ;;  %v3342_v23 = vld [vmem:[%s4640_s1 + $0x180] sm:$0xff]  ;;  %v3347_v24 = vld [vmem:[%s4640_s1 + $0x188] sm:$0xff]  ;;  %v3366_v31 = vld [vmem:[%s3241_s9 + $0x30] sm:$0xff]  ;;  %v3373_v34 = vrot.slane %v3334_v20, 2  ;;  %v308_v35 = vrot.slane %v3337_v21, 2 }
  0x2d   : > { %2586 = vmatpush3.bf16.msra.mxu0 %v2585_v48  ;;  %2618 = vmatpush3.bf16.msra.mxu1 %v2615_v45  ;;  %v3352_v25 = vld [vmem:[%s4640_s1 + $0x300] sm:$0xff]  ;;  %v3357_v27 = vld [vmem:[%s4640_s1 + $0x308] sm:$0xff]  ;;  %v3379_v36 = vld [vmem:[%s4640_s1 + $0x218] sm:$0xff]  ;;  %v248_v43 = vrot.slane %v3326_v16, 1  ;;  %v3404_v44 = vrot.slane %v3334_v20, 1  ;;  %v2633_v46 = vpack.c.bf16 %v3347_v24, %v3342_v23  ;;  %v310_v48 = vrot.slane %v3366_v31, 2 }
  0x2e   : > { %2588 = vmatprep.subr.bf16.mxu0 %v2587_v49  ;;  %2620 = vmatprep.subr.bf16.mxu1 %v2619_v58  ;;  %v3382_v37 = vld [vmem:[%s3241_s9 + $0x38] sm:$0xff]  ;;  %v3385_v38 = vld [vmem:[%s3241_s9 + $0x40] sm:$0x3]  ;;  %v3395_v41 = vld [vmem:[%s4640_s1 + $0x190] sm:$0xff]  ;;  %v2697_v47 = vpack.c.bf16 %v3357_v27, %v3352_v25  ;;  %v251_v53 = vrot.slane %v3337_v21, 1  ;;  %v2635_v57 = vpack.c.bf16 %v3379_v36, %v3363_v30  ;;  %v3452_v55 = vsel %vm299_vm1, %v305_v29, %v3373_v34 }
  0x2f   : > { %v3400_v42 = vld [vmem:[%s4640_s1 + $0x198] sm:$0xff]  ;;  %v3409_v45 = vld [vmem:[%s4640_s1 + $0x220] sm:$0xff]  ;;  %v3419_v49 = vld [vmem:[%s4640_s1 + $0x228] sm:$0xff]  ;;  %v313_v59 = vrot.slane %v3385_v38, 2  ;;  %4688 = vst [vmem:[#allocation9_spill] sm:$0xff] %v3452_v55  ;;  %v3456_v63 = vsel %vm299_vm1, %v3373_v34, %v308_v35  ;;  %v253_v3 = vrot.slane %v3366_v31, 1 }
  0x30   : > { %v3424_v52 = vld [vmem:[%s4640_s1 + $0x390] sm:$0xff]  ;;  %v3428_v54 = vld [vmem:[%s3241_s9 + $0x48] sm:$0xff]  ;;  %v3442_v60 = vld [vmem:[%s4640_s1 + $0x398] sm:$0xff]  ;;  %v3475_v4 = vrot.slane %v3382_v37, 1  ;;  %v3505_v13 = vsel %vm242_vm0, %v3404_v44, %v251_v53  ;;  %v256_v29 = vrot.slane %v3385_v38, 1 }
  0x31   : > { %2590 = vmatpush3.bf16.msra.mxu0 %v2589_v2  ;;  %2622 = vmatpush3.bf16.msra.mxu1 %v2619_v58  ;;  %4686 = vst [vmem:[#allocation7_spill] sm:$0xff] %v3428_v54  ;;  %v3436_v58 = vrot.slane %v3382_v37, 2  ;;  %v3445_v61 = vld [vmem:[%s3241_s9 + $0x50] sm:$0xff]  ;;  %v3448_v62 = vld [vmem:[%s3241_s9 + $0x58] sm:$0x3]  ;;  %v3461_v0 = vld [vmem:[%s4640_s1 + $0x1a0] sm:$0xff]  ;;  %v2699_v12 = vpack.c.bf16 %v3442_v60, %v3424_v52 }
  0x32   : > { %2592 = vmatprep.subr.bf16.mxu0 %v2591_v6  ;;  %2624 = vmatprep.subr.bf16.mxu1 %v2623_v10  ;;  %4687 = vst [vmem:[#allocation8_spill] sm:$0xff] %v3445_v61  ;;  %v3466_v1 = vld [vmem:[%s4640_s1 + $0x1a8] sm:$0xff]  ;;  %v3471_v2 = vld [vmem:[%s4640_s1 + $0x310] sm:$0xff]  ;;  %v3481_v6 = vsel %vm242_vm0, %v248_v43, %v3404_v44  ;;  %v3488_v8 = vld [vmem:[%s4640_s1 + $0x318] sm:$0xff]  ;;  %v315_v9 = vrot.slane %v3428_v54, 2  ;;  %v3508_v14 = vrot.slane %v3445_v61, 2 }
  0x33   : > { %4689 = vst [vmem:[#allocation10_spill] sm:$0xff] %v3481_v6  ;;  %v3499_v11 = vld [vmem:[%s4640_s1 + $0x238] sm:$0xff]  ;;  %v318_v15 = vrot.slane %v3448_v62, 2  ;;  %v3515_v18 = vld [vmem:[%s3241_s9 + $0x68] sm:$0xff]  ;;  %v3518_v19 = vld [vmem:[%s3241_s9 + $0x70] sm:$0x3]  ;;  %v3522_v21 = vsel %vm299_vm1, %v310_v48, %v3436_v58 }
  0x34   : > { %4691 = vst [vmem:[#allocation12_spill] sm:$0xff] %v3515_v18  ;;  %4692 = vst [vmem:[#allocation13_spill] sm:$0xff] %v3522_v21  ;;  %v3538_v27 = vld [vmem:[%s4640_s1 + $0x1b8] sm:$0xff]  ;;  %v3543_v28 = vld [vmem:[%s4640_s1 + $0x240] sm:$0xff]  ;;  %v3570_v43 = vrot.slane %v3445_v61, 1  ;;  %v3577_v53 = vrot.slane %v3515_v18, 2 }
  0x35   : > { %2594 = vmatpush3.bf16.msra.mxu0 %v2593_v17  ;;  %2626 = vmatpush3.bf16.msra.mxu1 %v2623_v10  ;;  %v3494_v10 = vld [vmem:[%s4640_s1 + $0x230] sm:$0xff]  ;;  %v3512_v17 = vld [vmem:[%s3241_s9 + $0x60] sm:$0xff]  ;;  %v3556_v35 = vld [vmem:[%s4640_s1 + $0x248] sm:$0xff] }
  0x36   : > { %2596 = vmatprep.subr.bf16.mxu0 %v2595_v22  ;;  %2628 = vmatprep.subr.bf16.mxu1 %v2627_v26  ;;  %4690 = vst [vmem:[#allocation11_spill] sm:$0xff] %v3512_v17  ;;  %v3526_v22 = vsel %vm299_vm1, %v3436_v58, %v313_v59  ;;  %v3561_v38 = vld [vmem:[%s4640_s1 + $0x3a0] sm:$0xff]  ;;  %v320_v52 = vrot.slane %v3512_v17, 2  ;;  %v323_v59 = vrot.slane %v3518_v19, 2  ;;  %v3617_v23 = vld [vmem:[%s4640_s1 + $0x328] sm:$0xff]  ;;  %v3642_v30 = vld [vmem:[%s4640_s1 + $0x258] sm:$0xff] }
  0x37   : > { %v3583_v60 = vld [vmem:[%s4640_s1 + $0x1c0] sm:$0xff]  ;;  %v3620_v24 = vld [vmem:[%s3241_s9 + $0x88] sm:$0x3]  ;;  %v3645_v36 = vld [vmem:[%s3241_s9 + $0x90] sm:$0xff] }
  0x38   : > { %v3612_v25 = vld [vmem:[%s4640_s1 + $0x320] sm:$0xff]  ;;  %4697 = vst [vmem:[#allocation18_spill] sm:$0xff] %v3620_v24  ;;  %4698 = vst [vmem:[#allocation19_spill] sm:$0xff] %v3645_v36  ;;  %v3675_v48 = vsel %vm299_vm1, %v320_v52, %v3577_v53  ;;  %v3679_v7 = vsel %vm299_vm1, %v3577_v53, %v323_v59  ;;  %v4701_v52 = vpack.c.bf16 %v3400_v42, %v3395_v41  ;;  %v3709_v41 = vld [vmem:[%s4640_s1 + $0x268] sm:$0xff] }
  0x39   : > { %2598 = vmatpush3.bf16.msra.mxu0 %v2597_v32  ;;  %2630 = vmatpush3.bf16.msra.mxu1 %v2627_v26  ;;  %v3533_v26 = vld [vmem:[%s4640_s1 + $0x1b0] sm:$0xff]  ;;  %v2701_v32 = vpack.c.bf16 %v3488_v8, %v3471_v2  ;;  %v3594_v2 = vld [vmem:[%s3241_s9 + $0x80] sm:$0xff]  ;;  %v3605_v8 = vsel %vm299_vm1, %v3508_v14, %v318_v15  ;;  %4699 = vst [vmem:[#allocation20_spill] sm:$0xff] %v3675_v48  ;;  %v3712_v42 = vld [vmem:[%s3241_s9 + $0xa8] sm:$0xff] }
  0x3a   : > { %2696 = vmatprep.subr.bf16.mxu0 %v2695_v40  ;;  %2632 = vmatprep.subr.bf16.mxu1 %v2631_v33  ;;  %v3551_v33 = vsel %vm242_vm0, %v253_v3, %v3475_v4  ;;  %v258_v40 = vrot.slane %v3428_v54, 1  ;;  %4695 = vst [vmem:[#allocation16_spill] sm:$0xff] %v3594_v2  ;;  %v3601_v3 = vsel %vm299_vm1, %v315_v9, %v3508_v14  ;;  %v3637_v15 = vld [vmem:[%s4640_s1 + $0x250] sm:$0xff]  ;;  %v3683_v5 = vld [vmem:[%s3241_s9 + $0xa0] sm:$0x3]  ;;  %4702 = vst [vmem:[#allocation22_spill] sm:$0xff] %v3712_v42 }
  0x3b   : > { %4693 = vst [vmem:[#allocation14_spill] sm:$0xff] %v3551_v33  ;;  %4696 = vst [vmem:[#allocation17_spill] sm:$0xff] %v3601_v3  ;;  %v3632_v9 = vsel %vm242_vm0, %v3475_v4, %v256_v29  ;;  %v4703_v59 = vpack.c.bf16 %v3419_v49, %v3409_v45  ;;  %v3737_v45 = vld [vmem:[%s3241_s9 + $0x28] sm:$0x3] }
  0x3c   : > { %469 = vmatmul.mubr.f32.vlgmr.msra.gmra.mrb[0].mxu0 %v3250_v50  ;;  %v3566_v50 = vld [vmem:[%s4640_s1 + $0x3a8] sm:$0xff]  ;;  %2432 = vmatmul.mubr.f32.vlgmr.msra.gmra.mrb[0].mxu1 %v3388_v39  ;;  %4700 = vst [vmem:[#allocation21_spill] sm:$0xff] %v3683_v5 }
  0x3d   : > { %2698 = vmatpush3.bf16.msra.mxu0 %v2697_v47  ;;  %v3588_v39 = vld [vmem:[%s4640_s1 + $0x1c8] sm:$0xff]  ;;  %v3591_v47 = vld [vmem:[%s3241_s9 + $0x78] sm:$0xff]  ;;  %2634 = vmatpush3.bf16.msra.mxu1 %v2633_v46 }
  0x3e   : > { %4694 = vst [vmem:[#allocation15_spill] sm:$0xff] %v3591_v47  ;;  %473 = vmatprep.mubr.f32.mxu0 %v247_v56  ;;  %2434 = vmatprep.mubr.f32.mxu1 %v3452_v55  ;;  %v2703_v56 = vpack.c.bf16 %v3566_v50, %v3561_v38  ;;  %v325_v29 = vrot.slane %v3591_v47, 2  ;;  %v3651_v38 = vrot.slane %v3594_v2, 2  ;;  %v3656_v50 = vld [vmem:[%s4640_s1 + $0x1d0] sm:$0xff]  ;;  %v3661_v46 = vld [vmem:[%s4640_s1 + $0x1d8] sm:$0xff] }
  0x3f   : > { %2636 = vmatprep.subr.bf16.mxu1 %v2635_v57  ;;  %v261_v57 = vrot.slane %v3448_v62, 1  ;;  %2700 = vmatprep.subr.bf16.mxu0 %v2699_v12  ;;  %v3665_v62 = vsel %vm242_vm0, %v258_v40, %v3570_v43  ;;  %v263_v12 = vrot.slane %v3512_v17, 1  ;;  %v328_v40 = vrot.slane %v3620_v24, 2  ;;  %v2029_v55 = vld [vmem:[%s4640_s1 + $0x3b0] sm:$0xff] }
  0x40   : > { %474 = vmatmul.mubr.f32.gmra.mrb[2].mxu0 %v3253_v51  ;;  %v3668_v51 = vld [vmem:[%s3241_s9 + $0x98] sm:$0xff]  ;;  %2435 = vmatmul.mubr.f32.gmra.mrb[2].mxu1 %v3456_v63  ;;  %v3692_v17 = vrot.slane %v3515_v18, 1  ;;  %v330_v24 = vrot.slane %v3645_v36, 2  ;;  %v2705_v36 = vpack.c.bf16 %v3617_v23, %v3612_v25  ;;  %v3742_v49 = vsel %vm299_vm1, %v325_v29, %v3651_v38  ;;  %v3748_v23 = vld [vmem:[%s4640_s1 + $0x1e0] sm:$0xff]  ;;  %v3770_v18 = vld [vmem:[%s4640_s1 + $0x1e8] sm:$0xff] }
  0x41   : > { %478 = vmatprep.mubr.f32.mxu0 %v3481_v6  ;;  %v2030_v63 = vld [vmem:[%s4640_s1 + $0x3b8] sm:$0xff]  ;;  %2638 = vmatpush3.bf16.msra.mxu1 %v4701_v52  ;;  %v3704_v6 = vld [vmem:[%s4640_s1 + $0x260] sm:$0xff]  ;;  %v266_v52 = vrot.slane %v3518_v19, 1  ;;  %v3724_v61 = vrot.slane %v3668_v51, 2  ;;  %v3728_v54 = vsel %vm242_vm0, %v3570_v43, %v261_v57  ;;  %v3731_v19 = vld [vmem:[%s3241_s9 + $0xb0] sm:$0xff]  ;;  %4705 = vst [vmem:[#allocation24_spill] sm:$0xff] %v3742_v49  ;;  %v4706_v29 = vpack.c.bf16 %v3466_v1, %v3461_v0 }
  0x42   : > { %2437 = vmatprep.mubr.f32.mxu1 %v3522_v21  ;;  %2640 = vmatprep.subr.bf16.mxu1 %v4703_v59  ;;  %v3734_v21 = vld [vmem:[%s3241_s9 + $0xb8] sm:$0x3]  ;;  %v333_v25 = vrot.slane %v3683_v5, 2  ;;  %v2013_v57 = vld [vmem:[%s4640_s1 + $0x330] sm:$0xff]  ;;  %v820_v59 = vrot.slane %v3737_v45, 2  ;;  %v3799_v0 = vsel %vm242_vm0, %v263_v12, %v3692_v17 }
  0x43   : > { %2702 = vmatpush3.bf16.msra.mxu0 %v2701_v32  ;;  %4704 = vst [vmem:[#allocation23_spill] sm:$0xff] %v3734_v21  ;;  %v2707_v32 = vpack.c.bf16 %v2030_v63, %v2029_v55  ;;  %v3761_v55 = vsel %vm299_vm1, %v3651_v38, %v328_v40  ;;  %v2032_v40 = vld [vmem:[%s4640_s1 + $0x3c8] sm:$0xff]  ;;  %v3784_v63 = vrot.slane %v3731_v19, 2  ;;  %v338_v5 = vrot.slane %v3734_v21, 2  ;;  %v3802_v1 = vld [vmem:[%s3241_s9 + $0x40] sm:$0x3] }
  0x44   : > { %479 = vmatmul.mubr.f32.gmra.mrb[4].mxu0 %v3326_v16  ;;  %2704 = vmatprep.subr.bf16.mxu0 %v2703_v56  ;;  %v2014_v56 = vld [vmem:[%s4640_s1 + $0x338] sm:$0xff]  ;;  %4707 = vst [vmem:[#allocation25_spill] sm:$0xff] %v3802_v1  ;;  %v3813_v21 = vsel %vm299_vm1, %v330_v24, %v3724_v61  ;;  %v3818_v12 = vld [vmem:[%s4640_s1 + $0x1f0] sm:$0xff]  ;;  %v3836_v24 = vsel %vm299_vm1, %v3724_v61, %v333_v25 }
  0x45   : > { %2438 = vmatmul.mubr.f32.gmra.mrb[4].mxu1 %v3526_v22  ;;  %483 = vmatprep.mubr.f32.mxu0 %v3505_v13  ;;  %v335_v22 = vrot.slane %v3712_v42, 2  ;;  %v2031_v13 = vld [vmem:[%s4640_s1 + $0x3c0] sm:$0xff]  ;;  %v3790_v42 = vld [vmem:[%s4640_s1 + $0x270] sm:$0xff]  ;;  %v3795_v16 = vld [vmem:[%s4640_s1 + $0x278] sm:$0xff]  ;;  %4710 = vst [vmem:[#allocation27_spill] sm:$0xff] %v3813_v21  ;;  %v2709_v47 = vpack.c.bf16 %v2014_v56, %v2013_v57  ;;  %v4712_v25 = vpack.c.bf16 %v3538_v27, %v3533_v26  ;;  %v3885_v26 = vrot.slane %v3668_v51, 1 }
  0x46   : > { %2642 = vmatpush3.bf16.msra.mxu1 %v4706_v29  ;;  %2440 = vmatprep.mubr.f32.mxu1 %v3601_v3  ;;  %v3806_v29 = vsel %vm299_vm1, %v3373_v34, %v820_v59  ;;  %v4709_v3 = vpack.c.bf16 %v3499_v11, %v3494_v10  ;;  %v3823_v34 = vld [vmem:[%s4640_s1 + $0x1f8] sm:$0xff]  ;;  %v1965_v10 = vld [vmem:[%s4640_s1 + $0x280] sm:$0xff]  ;;  %v3830_v11 = vsel %vm242_vm0, %v3692_v17, %v266_v52  ;;  %v2016_v52 = vld [vmem:[%s4640_s1 + $0x348] sm:$0xff]  ;;  %v3847_v59 = vrot.slane %v3594_v2, 1 }
  0x47   : > { %4708 = vst [vmem:[#allocation26_spill] sm:$0xff] %v3806_v29  ;;  %2706 = vmatpush3.bf16.msra.mxu0 %v2705_v36  ;;  %v2711_v57 = vpack.c.bf16 %v2032_v40, %v2031_v13  ;;  %v2015_v56 = vld [vmem:[%s4640_s1 + $0x340] sm:$0xff]  ;;  %v1917_v29 = vld [vmem:[%s3241_s9 + $0x58] sm:$0x3]  ;;  %v2033_v13 = vld [vmem:[%s4640_s1 + $0x3d0] sm:$0xff] }
  0x48   : > { %2644 = vmatprep.subr.bf16.mxu1 %v4709_v3  ;;  %v825_v3 = vrot.slane %v3802_v1, 2  ;;  %484 = vmatmul.mubr.f32.gmra.mrb[6].mxu0 %v3334_v20  ;;  %v2034_v40 = vld [vmem:[%s4640_s1 + $0x3d8] sm:$0xff]  ;;  %v774_v36 = vrot.slane %v1917_v29, 1  ;;  %v830_v2 = vrot.slane %v1917_v29, 2  ;;  %v3877_v20 = vsel %vm299_vm1, %v3784_v63, %v338_v5  ;;  %v1967_v29 = vld [vmem:[%s4640_s1 + $0x290] sm:$0xff] }
  0x49   : > { %2708 = vmatprep.subr.bf16.mxu0 %v2707_v32  ;;  %2441 = vmatmul.mubr.f32.gmra.mrb[6].mxu1 %v3605_v8  ;;  %v1966_v32 = vld [vmem:[%s4640_s1 + $0x288] sm:$0xff]  ;;  %v1920_v27 = vld [vmem:[%s3241_s9 + $0x70] sm:$0x3]  ;;  %v2713_v5 = vpack.c.bf16 %v2016_v52, %v2015_v56  ;;  %v3902_v1 = vld [vmem:[%s4640_s1 + $0x358] sm:$0xff]  ;;  %v764_v52 = vrot.slane %v3737_v45, 1  ;;  %v3929_v45 = vrot.slane %v3731_v19, 1 }
  0x4a   : > { %488 = vmatprep.mubr.f32.mxu0 %v3551_v33  ;;  %v3865_v8 = vsel %vm299_vm1, %v3436_v58, %v825_v3  ;;  %2646 = vmatpush3.bf16.msra.mxu1 %v4712_v25  ;;  %v3873_v33 = vsel %vm299_vm1, %v335_v22, %v3784_v63  ;;  %v4714_v22 = vpack.c.bf16 %v3556_v35, %v3543_v28  ;;  %v1968_v3 = vld [vmem:[%s4640_s1 + $0x298] sm:$0xff]  ;;  %v3897_v25 = vld [vmem:[%s4640_s1 + $0x350] sm:$0xff]  ;;  %v779_v35 = vrot.slane %v1920_v27, 1 }
  0x4b   : > { %4711 = vst [vmem:[#allocation28_spill] sm:$0xff] %v3865_v8  ;;  %2443 = vmatprep.mubr.f32.mxu1 %v3675_v48  ;;  %4713 = vst [vmem:[#allocation29_spill] sm:$0xff] %v3873_v33  ;;  %2710 = vmatpush3.bf16.msra.mxu0 %v2709_v47  ;;  %v3906_v28 = vsel %vm242_vm0, %v3570_v43, %v774_v36  ;;  %v3910_v47 = vsel %vm299_vm1, %v3508_v14, %v830_v2  ;;  %v1923_v48 = vld [vmem:[%s3241_s9 + $0x88] sm:$0x3]  ;;  %v3918_v8 = vld [vmem:[%s3241_s9 + $0x40] sm:$0x3] }
  0x4c   : > { %2648 = vmatprep.subr.bf16.mxu1 %v4714_v22  ;;  %4715 = vst [vmem:[#allocation30_spill] sm:$0xff] %v3910_v47  ;;  %489 = vmatmul.mubr.f32.gmra.mrb[8].mxu0 %v3366_v31  ;;  %v3913_v56 = vpack.c.bf16 %v1966_v32, %v1965_v10  ;;  %v2715_v22 = vpack.c.bf16 %v2034_v40, %v2033_v13  ;;  %v835_v36 = vrot.slane %v1920_v27, 2  ;;  %v2035_v2 = vld [vmem:[%s4640_s1 + $0x3e0] sm:$0xff]  ;;  %v2036_v10 = vld [vmem:[%s4640_s1 + $0x3e8] sm:$0xff]  ;;  %v784_v32 = vrot.slane %v1923_v48, 1 }
  0x4d   : > { %2712 = vmatprep.subr.bf16.mxu0 %v2711_v57  ;;  %2444 = vmatmul.mubr.f32.gmra.mrb[8].mxu1 %v3679_v7  ;;  %v3933_v57 = vsel %vm242_vm0, %v3692_v17, %v779_v35  ;;  %v1282_v7 = vrot.slane %v3918_v8, 1  ;;  %v3940_v13 = vpack.c.bf16 %v1968_v3, %v1967_v29  ;;  %v2717_v40 = vpack.c.bf16 %v3902_v1, %v3897_v25  ;;  %v3947_v27 = vld [vmem:[%s4640_s1 + $0x360] sm:$0xff]  ;;  %v3951_v47 = vld [vmem:[%s3241_s9 + $0x58] sm:$0x3]  ;;  %v3963_v1 = vld [vmem:[%s4640_s1 + $0x368] sm:$0xff] }
  0x4e   : > { %493 = vmatprep.mubr.f32.mxu0 %v3632_v9  ;;  %v4716_v9 = vpack.c.bf16 %v3588_v39, %v3583_v60  ;;  %2446 = vmatprep.mubr.f32.mxu1 %v3742_v49  ;;  %v1926_v35 = vld [vmem:[%s3241_s9 + $0xa0] sm:$0x3]  ;;  %v3955_v60 = vsel %vm299_vm1, %v3577_v53, %v835_v36  ;;  %v840_v39 = vrot.slane %v1923_v48, 2  ;;  %v4718_v29 = vpack.c.bf16 %v3642_v30, %v3637_v15  ;;  %v3968_v3 = vld [vmem:[%s4640_s1 + $0x3f0] sm:$0xff]  ;;  %v3973_v48 = vld [vmem:[%s4640_s1 + $0x3f8] sm:$0xff] }
  0x4f   : > { %4717 = vst [vmem:[#allocation31_spill] sm:$0xff] %v3955_v60  ;;  %2714 = vmatpush3.bf16.msra.mxu0 %v2713_v5  ;;  %v3977_v15 = vsel %vm242_vm0, %v3847_v59, %v784_v32  ;;  %v3981_v30 = vsel %vm242_vm0, %v3475_v4, %v1282_v7  ;;  %v789_v5 = vrot.slane %v1926_v35, 1  ;;  %v1287_v25 = vrot.slane %v3951_v47, 1  ;;  %v3991_v49 = vld [vmem:[%s3241_s9 + $0x70] sm:$0x3]  ;;  %v3994_v32 = vld [vmem:[%s3241_s9 + $0xc0] sm:$0xff] }
  0x50   : > { %2650 = vmatpush3.bf16.msra.mxu1 %v4716_v9  ;;  %494 = vmatmul.mubr.f32.gmra.mrb[10].mxu0 %v3382_v37  ;;  %v3987_v36 = vsel %vm242_vm0, %v3404_v44, %v764_v52  ;;  %v2719_v9 = vpack.c.bf16 %v2036_v10, %v2035_v2  ;;  %v3998_v7 = vsel %vm299_vm1, %v3651_v38, %v840_v39  ;;  %v845_v60 = vrot.slane %v1926_v35, 2  ;;  %v4012_v10 = vld [vmem:[%s3241_s9 + $0xc8] sm:$0xff]  ;;  %v4028_v39 = vld [vmem:[%s4640_s1 + $0x378] sm:$0xff] }
  0x51   : > { %2652 = vmatprep.subr.bf16.mxu1 %v4718_v29  ;;  %2716 = vmatprep.subr.bf16.mxu0 %v2715_v22  ;;  %v1929_v29 = vld [vmem:[%s3241_s9 + $0xb8] sm:$0x3]  ;;  %4719 = vst [vmem:[#allocation32_spill] sm:$0xff] %v3998_v7  ;;  %v4004_v44 = vsel %vm242_vm0, %v3885_v26, %v789_v5  ;;  %v4008_v52 = vsel %vm242_vm0, %v3570_v43, %v1287_v25  ;;  %v1292_v2 = vrot.slane %v3991_v49, 1  ;;  %v4023_v43 = vld [vmem:[%s4640_s1 + $0x370] sm:$0xff] }
  0x52   : > { %2447 = vmatmul.mubr.f32.gmra.mrb[10].mxu1 %v3761_v55  ;;  %498 = vmatprep.mubr.f32.mxu0 %v3665_v62  ;;  %v794_v22 = vrot.slane %v1929_v29, 1  ;;  %v4720_v35 = vpack.c.bf16 %v3661_v46, %v3656_v50  ;;  %v2721_v55 = vpack.c.bf16 %v3963_v1, %v3947_v27  ;;  %v796_v46 = vrot.slane %v3994_v32, 1  ;;  %v4033_v5 = vld [vmem:[%s3241_s9 + $0xd0] sm:$0x3] }
  0x53   : > { %2449 = vmatprep.mubr.f32.mxu1 %v3813_v21  ;;  %v797_v50 = vrot.slane %v4012_v10, 1  ;;  %v4037_v27 = vsel %vm299_vm1, %v3724_v61, %v845_v60  ;;  %v4722_v1 = vpack.c.bf16 %v3709_v41, %v3704_v6  ;;  %2718 = vmatpush3.bf16.msra.mxu0 %v2717_v40  ;;  %v2723_v25 = vpack.c.bf16 %v3973_v48, %v3968_v3  ;;  %v4054_v60 = vld [vmem:[%s3241_s9 + $0x88] sm:$0x3]  ;;  %v1997_v40 = vld [vmem:[%s3241_s9 + $0xa0] sm:$0x3] }
  0x54   : > { %2654 = vmatpush3.bf16.msra.mxu1 %v4720_v35  ;;  %4721 = vst [vmem:[#allocation33_spill] sm:$0xff] %v4037_v27  ;;  %v4046_v35 = vsel %vm242_vm0, %v3929_v45, %v794_v22  ;;  %v4050_v21 = vsel %vm242_vm0, %v3692_v17, %v1292_v2  ;;  %v799_v7 = vrot.slane %v4033_v5, 1  ;;  %v4723_v27 = vld [vmem:[#allocation7_spill] sm:$0xff]  ;;  %2720 = vmatprep.subr.bf16.mxu0 %v2719_v9  ;;  %v1297_v41 = vrot.slane %v4054_v60, 1  ;;  %v2039_v48 = vld [vmem:[%s4640_s1 + $0x400] sm:$0xff]  ;;  %v2040_v9 = vld [vmem:[%s4640_s1 + $0x408] sm:$0xff] }
  0x55   : > { %2656 = vmatprep.subr.bf16.mxu1 %v4722_v1  ;;  %499 = vmatmul.mubr.f32.gmra.mrb[12].mxu0 %v4723_v27  ;;  %v4058_v6 = vsel %vm242_vm0, %v796_v46, %v797_v50  ;;  %v850_v3 = vrot.slane %v1929_v29, 2  ;;  %v2725_v17 = vpack.c.bf16 %v4028_v39, %v4023_v43  ;;  %v1338_v22 = vrot.slane %v3918_v8, 2  ;;  %v2000_v2 = vld [vmem:[%s3241_s9 + $0xb8] sm:$0x3]  ;;  %v2003_v1 = vld [vmem:[%s3241_s9 + $0xd0] sm:$0x3] }
  0x56   : > { %2450 = vmatmul.mubr.f32.gmra.mrb[12].mxu1 %v3836_v24  ;;  %503 = vmatprep.mubr.f32.mxu0 %v3728_v54  ;;  %v4074_v29 = vsel %vm242_vm0, %v797_v50, %v799_v7  ;;  %v1302_v24 = vrot.slane %v1997_v40, 1  ;;  %v4725_v54 = vpack.c.bf16 %v3770_v18, %v3748_v23  ;;  %v4083_v43 = vsel %vm242_vm0, %v3847_v59, %v1297_v41  ;;  %v4087_v8 = vld [vmem:[%s3241_s9 + $0xd8] sm:$0xff]  ;;  %v4090_v7 = vld [vmem:[%s3241_s9 + $0xe0] sm:$0xff] }
  0x57   : > { %4724 = vst [vmem:[#allocation7_spill] sm:$0xff] %v4074_v29  ;;  %2452 = vmatprep.mubr.f32.mxu1 %v3873_v33  ;;  %4726 = vst [vmem:[#allocation34_spill] sm:$0xff] %v4083_v43  ;;  %v1358_v39 = vrot.slane %v1997_v40, 2  ;;  %v1307_v46 = vrot.slane %v2000_v2, 1  ;;  %v4094_v29 = vsel %vm299_vm1, %v3784_v63, %v850_v3  ;;  %v4728_v18 = vpack.c.bf16 %v3795_v16, %v3790_v42  ;;  %v4729_v33 = vld [vmem:[#allocation8_spill] sm:$0xff] }
  0x58   : > { %2658 = vmatpush3.bf16.msra.mxu1 %v4725_v54  ;;  %4727 = vst [vmem:[#allocation35_spill] sm:$0xff] %v4094_v29  ;;  %2722 = vmatpush3.bf16.msra.mxu0 %v2721_v55  ;;  %v4101_v23 = vsel %vm242_vm0, %v3885_v26, %v1302_v24  ;;  %v1312_v41 = vrot.slane %v2003_v1, 1  ;;  %v1314_v40 = vrot.slane %v4087_v8, 1  ;;  %v1315_v54 = vrot.slane %v4090_v7, 1  ;;  %v2006_v55 = vld [vmem:[%s3241_s9 + $0xe8] sm:$0x3] }
  0x59   : > { %2660 = vmatprep.subr.bf16.mxu1 %v4728_v18  ;;  %504 = vmatmul.mubr.f32.gmra.mrb[14].mxu0 %v4729_v33  ;;  %v4106_v43 = vpack.c.bf16 %v2040_v9, %v2039_v48  ;;  %v4110_v3 = vsel %vm242_vm0, %v3929_v45, %v1307_v46  ;;  %v852_v16 = vrot.slane %v3994_v32, 2  ;;  %v853_v42 = vrot.slane %v4012_v10, 2  ;;  %v4731_v18 = vld [vmem:[#allocation10_spill] sm:$0xff] }
  0x5a   : > { %2724 = vmatprep.subr.bf16.mxu0 %v2723_v25  ;;  %2453 = vmatmul.mubr.f32.gmra.mrb[14].mxu1 %v3877_v20  ;;  %v4118_v24 = vsel %vm242_vm0, %v797_v50, %v1312_v41  ;;  %v4121_v25 = vsel %vm242_vm0, %v1314_v40, %v1315_v54  ;;  %v1317_v48 = vrot.slane %v2006_v55, 1  ;;  %v855_v9 = vrot.slane %v4033_v5, 2  ;;  %v4733_v41 = vld [vmem:[#allocation11_spill] sm:$0xff] }
  0x5b   : > { %508 = vmatprep.mubr.f32.mxu0 %v3799_v0  ;;  %v4730_v46 = vpack.c.bf16 %v3823_v34, %v3818_v12  ;;  %986 = vmatprep.mubr.f32.mxu1 %v4731_v18  ;;  %v4129_v29 = vsel %vm299_vm1, %v852_v16, %v853_v42  ;;  %v4133_v20 = vsel %vm299_vm1, %v3436_v58, %v1338_v22  ;;  %v1969_v12 = vld [vmem:[%s4640_s1 + $0x2a0] sm:$0xff]  ;;  %v1970_v34 = vld [vmem:[%s4640_s1 + $0x2a8] sm:$0xff]  ;;  %v4734_v40 = vld [vmem:[#allocation15_spill] sm:$0xff] }
  0x5c   : > { %v4137_v50 = vsel %vm299_vm1, %v3724_v61, %v1358_v39  ;;  %2726 = vmatpush3.bf16.msra.mxu0 %v2725_v17  ;;  %v4147_v5 = vsel %vm242_vm0, %v1315_v54, %v1317_v48  ;;  %v4150_v22 = vsel %vm299_vm1, %v853_v42, %v855_v9  ;;  %v1343_v61 = vrot.slane %v3951_v47, 2  ;;  %v4736_v18 = vld [vmem:[#allocation18_spill] sm:$0xff]  ;;  %v4737_v54 = vld [vmem:[#allocation5_spill] sm:$0xff] }
  0x5d   : > { %2662 = vmatpush3.bf16.msra.mxu1 %v4730_v46  ;;  %4732 = vst [vmem:[#allocation8_spill] sm:$0xff] %v4137_v50  ;;  %v1363_v39 = vrot.slane %v2000_v2, 2  ;;  %509 = vmatmul.mubr.f32.gmra.mrb[16].mxu0 %v4733_v41  ;;  %v4735_v16 = vrot.slane %v4734_v40, 1  ;;  %v271_v50 = vrot.slane %v4736_v18, 1  ;;  %v1348_v17 = vrot.slane %v3991_v49, 2  ;;  %v4738_v47 = vld [vmem:[#allocation25_spill] sm:$0xff] }
  0x5e   : > { %2664 = vmatprep.subr.bf16.mxu1 %v3913_v56  ;;  %2728 = vmatprep.subr.bf16.mxu0 %v4106_v43  ;;  %v769_v2 = vrot.slane %v4738_v47, 1  ;;  %v4168_v48 = vsel %vm299_vm1, %v3508_v14, %v1343_v61  ;;  %v2671_v49 = vpack.c.bf16 %v1970_v34, %v1969_v12  ;;  %v1373_v61 = vrot.slane %v2006_v55, 2  ;;  %v1971_v12 = vld [vmem:[%s4640_s1 + $0x2b0] sm:$0xff]  ;;  %v4740_v34 = vld [vmem:[#allocation6_spill] sm:$0xff] }
  0x5f   : > { %v4158_v46 = vsel %vm242_vm0, %v4735_v16, %v3847_v59  ;;  %513 = vmatprep.mubr.f32.mxu0 %v3830_v11  ;;  %v4172_v9 = vsel %vm299_vm1, %v3784_v63, %v1363_v39  ;;  %v1368_v16 = vrot.slane %v2003_v1, 2  ;;  %v4178_v18 = vsel %vm299_vm1, %v3577_v53, %v1348_v17  ;;  %v1972_v53 = vld [vmem:[%s4640_s1 + $0x2b8] sm:$0xff]  ;;  %v4741_v39 = vld [vmem:[#allocation14_spill] sm:$0xff] }
  0x60   : > { %987 = vmatmul.mubr.f32.vlgmr.msra.gmra.mrb[16].mxu1 %v4737_v54  ;;  %v1370_v11 = vrot.slane %v4087_v8, 2  ;;  %v1371_v63 = vrot.slane %v4090_v7, 2  ;;  %v1353_v1 = vrot.slane %v4054_v60, 2  ;;  %v272_v17 = vsel %vm242_vm0, %v3847_v59, %v271_v50  ;;  %v4742_v54 = vld [vmem:[#allocation19_spill] sm:$0xff]  ;;  %v4743_v59 = vld [vmem:[#allocation21_spill] sm:$0xff] }
  0x61   : > { %2666 = vmatpush3.bf16.msra.mxu1 %v3913_v56  ;;  %991 = vmatprep.mubr.f32.mxu1 %v3987_v36  ;;  %v4183_v14 = vsel %vm299_vm1, %v853_v42, %v1368_v16  ;;  %v4739_v56 = vld [vmem:[#allocation12_spill] sm:$0xff]  ;;  %v273_v47 = vrot.slane %v4742_v54, 1  ;;  %v4213_v16 = vsel %vm242_vm0, %v3475_v4, %v769_v2  ;;  %v276_v50 = vrot.slane %v4743_v59, 1  ;;  %v1979_v59 = vld [vmem:[%s4640_s1 + $0x2f0] sm:$0xff] }
  0x62   : > { %2668 = vmatprep.subr.bf16.mxu1 %v3940_v13  ;;  %514 = vmatmul.mubr.f32.gmra.mrb[18].mxu0 %v4739_v56  ;;  %v4197_v42 = vsel %vm299_vm1, %v1370_v11, %v1371_v63  ;;  %v4201_v60 = vsel %vm299_vm1, %v3651_v38, %v1353_v1  ;;  %v4204_v55 = vsel %vm299_vm1, %v1371_v63, %v1373_v61  ;;  %v1973_v38 = vld [vmem:[%s4640_s1 + $0x2c0] sm:$0xff]  ;;  %v4744_v63 = vld [vmem:[#allocation16_spill] sm:$0xff]  ;;  %v1975_v1 = vld [vmem:[%s4640_s1 + $0x2d0] sm:$0xff] }
  0x63   : > { %518 = vmatprep.mubr.f32.mxu0 %v4158_v46  ;;  %v2675_v11 = vpack.c.bf16 %v1972_v53, %v1971_v12  ;;  %v4226_v4 = vsel %vm242_vm0, %v273_v47, %v3885_v26  ;;  %v1976_v61 = vld [vmem:[%s4640_s1 + $0x2d8] sm:$0xff]  ;;  %v4745_v12 = vld [vmem:[#allocation22_spill] sm:$0xff] }
  0x64   : > { %992 = vmatmul.mubr.f32.gmra.mrb[18].mxu1 %v4740_v34  ;;  %v278_v53 = vrot.slane %v4745_v12, 1  ;;  %v2683_v34 = vpack.c.bf16 %v1976_v61, %v1975_v1  ;;  %v1978_v47 = vld [vmem:[%s4640_s1 + $0x2e8] sm:$0xff]  ;;  %v2041_v61 = vld [vmem:[%s4640_s1 + $0x410] sm:$0xff] }
  0x65   : > { %996 = vmatprep.mubr.f32.mxu1 %v4741_v39  ;;  %2670 = vmatpush3.bf16.msra.mxu1 %v3940_v13  ;;  %v1974_v13 = vld [vmem:[%s4640_s1 + $0x2c8] sm:$0xff] }
  0x66   : > { %2672 = vmatprep.subr.bf16.mxu1 %v2671_v49  ;;  %519 = vmatmul.mubr.f32.gmra.mrb[20].mxu0 %v4734_v40  ;;  %v2679_v2 = vpack.c.bf16 %v1974_v13, %v1973_v38 }
  0x67   : > { %523 = vmatprep.mubr.f32.mxu0 %v272_v17  ;;  %v1977_v17 = vld [vmem:[%s4640_s1 + $0x2e0] sm:$0xff] }
  0x68   : > { %997 = vmatmul.mubr.f32.gmra.mrb[20].mxu1 %v3366_v31  ;;  %v2687_v13 = vpack.c.bf16 %v1978_v47, %v1977_v17  ;;  %v2046_v47 = vld [vmem:[%s4640_s1 + $0x438] sm:$0xff] }
  0x69   : > { %1001 = vmatprep.mubr.f32.mxu1 %v4213_v16  ;;  %2674 = vmatpush3.bf16.msra.mxu1 %v2671_v49  ;;  %v277_v49 = vsel %vm242_vm0, %v3885_v26, %v276_v50  ;;  %v4253_v26 = vsel %vm242_vm0, %v278_v53, %v3929_v45  ;;  %v1980_v50 = vld [vmem:[%s4640_s1 + $0x2f8] sm:$0xff]  ;;  %v2043_v53 = vld [vmem:[%s4640_s1 + $0x420] sm:$0xff] }
  0x6a   : > { %2676 = vmatprep.subr.bf16.mxu1 %v2675_v11  ;;  %524 = vmatmul.mubr.f32.gmra.mrb[22].mxu0 %v4744_v63  ;;  %v2691_v1 = vpack.c.bf16 %v1980_v50, %v1979_v59  ;;  %v2052_v59 = vld [vmem:[%s4640_s1 + $0x468] sm:$0xff] }
  0x6b   : > { %528 = vmatprep.mubr.f32.mxu0 %v4226_v4 }
  0x6c   : > { %1002 = vmatmul.mubr.f32.gmra.mrb[22].mxu1 %v3382_v37 }
  0x6d   : > { %1006 = vmatprep.mubr.f32.mxu1 %v3665_v62  ;;  %2678 = vmatpush3.bf16.msra.mxu1 %v2675_v11  ;;  %v4746_v11 = vld [vmem:[#allocation23_spill] sm:$0xff] }
  0x6e   : > { %2680 = vmatprep.subr.bf16.mxu1 %v2679_v2  ;;  %529 = vmatmul.mubr.f32.gmra.mrb[24].mxu0 %v4742_v54  ;;  %v281_v38 = vrot.slane %v4746_v11, 1  ;;  %v2048_v11 = vld [vmem:[%s4640_s1 + $0x448] sm:$0xff] }
  0x6f   : > { %533 = vmatprep.mubr.f32.mxu0 %v277_v49 }
  0x70   : > { %1007 = vmatmul.mubr.f32.gmra.mrb[24].mxu1 %v4723_v27 }
  0x71   : > { %1011 = vmatprep.mubr.f32.mxu1 %v3906_v28  ;;  %2682 = vmatpush3.bf16.msra.mxu1 %v2679_v2  ;;  %v282_v2 = vsel %vm242_vm0, %v3929_v45, %v281_v38  ;;  %v2042_v45 = vld [vmem:[%s4640_s1 + $0x418] sm:$0xff] }
  0x72   : > { %2684 = vmatprep.subr.bf16.mxu1 %v2683_v34  ;;  %534 = vmatmul.mubr.f32.gmra.mrb[26].mxu0 %v3668_v51  ;;  %v4281_v49 = vpack.c.bf16 %v2042_v45, %v2041_v61  ;;  %v4749_v61 = vld [vmem:[#allocation9_spill] sm:$0xff] }
  0x73   : > { %538 = vmatprep.mubr.f32.mxu0 %v4253_v26  ;;  %v4751_v45 = vld [vmem:[#allocation13_spill] sm:$0xff] }
  0x74   : > { %1012 = vmatmul.mubr.f32.gmra.mrb[26].mxu1 %v4729_v33 }
  0x75   : > { %1016 = vmatprep.mubr.f32.mxu1 %v3799_v0  ;;  %2686 = vmatpush3.bf16.msra.mxu1 %v2683_v34  ;;  %v2044_v34 = vld [vmem:[%s4640_s1 + $0x428] sm:$0xff] }
  0x76   : > { %2688 = vmatprep.subr.bf16.mxu1 %v2687_v13  ;;  %539 = vmatmul.mubr.f32.gmra.mrb[28].mxu0 %v4745_v12  ;;  %v4296_v17 = vpack.c.bf16 %v2044_v34, %v2043_v53  ;;  %v4753_v53 = vld [vmem:[#allocation17_spill] sm:$0xff]  ;;  %v2945_v34 = vld [vmem:[%s3241_s9 + $0x30] sm:$0xff]  ;;  %s2950_s9 = sshll.u32 %s3042_s20, 4  ;;  %s2951_s9 = int_to_ptr.vmem [resolvable:$false] %s2950_s9 }
  0x77   : > { %543 = vmatprep.mubr.f32.mxu0 %v282_v2  ;;  %v2054_v2 = vld [vmem:[%s4640_s1 + $0x478] sm:$0xff]  ;;  %s2952_s21 = scalar_lea.vmem %s2951_s9, 4096  ;;  %p2953_p2 = scmp.lt.s32.totalorder %s4579_s4, %s2951_s9 }
  0x78   : > { %1017 = vmatmul.mubr.f32.gmra.mrb[28].mxu1 %v4733_v41  ;;  %p2954_p4 = scmp.lt.s32.totalorder %s2952_s21, %s2946_s11 }
  0x79   : > { %1021 = vmatprep.mubr.f32.mxu1 %v3933_v57  ;;  %2690 = vmatpush3.bf16.msra.mxu1 %v2687_v13  ;;  %v2050_v13 = vld [vmem:[%s4640_s1 + $0x458] sm:$0xff] }
  0x7a   : > { %2692 = vmatprep.subr.bf16.mxu1 %v2691_v1  ;;  %544 = vmatmul.mubr.f32.gmra.mrb[30].mxu0 %v3731_v19  ;;  %p2955_p5 = por %p2954_p4, %p2953_p2 }
  0x7b   : > { %1504 = vmatprep.mubr.f32.mxu0 %v4741_v39 }
  0x7c   : > { %1022 = vmatmul.mubr.f32.gmra.mrb[30].mxu1 %v4739_v56  ;;  %p2956_p6 = pnand %p2955_p5, %p2949_p1 }
  0x7d   : > { %1026 = vmatprep.mubr.f32.mxu1 %v4158_v46  ;;  %2694 = vmatpush3.bf16.msra.mxu1 %v2691_v1  ;;  %v4748_v1 = vld [vmem:[#allocation7_spill] sm:$0xff] }
  0x7e   : > { %2759 = vmatprep.subr.bf16.mxu1 %v4106_v43  ;;  %1505 = vmatmul.mubr.f32.vlgmr.msra.gmra.mrb[32].mxu0 %v3366_v31  ;;  %v2045_v31 = vld [vmem:[%s4640_s1 + $0x430] sm:$0xff] }
  0x7f   : > { %2730 = vmatpush3.bf16.msra.mxu0 %v4106_v43  ;;  %1509 = vmatprep.mubr.f32.mxu0 %v3981_v30  ;;  %v4310_v30 = vpack.c.bf16 %v2046_v47, %v2045_v31 }
  0x80   : > { %1027 = vmatmul.mubr.f32.gmra.mrb[32].mxu1 %v4734_v40  ;;  %2732 = vmatprep.subr.bf16.mxu0 %v4281_v49 }
  0x81   : > { %1031 = vmatprep.mubr.f32.mxu1 %v3977_v15 }
  0x82   : > { %1510 = vmatmul.mubr.f32.gmra.mrb[34].mxu0 %v3382_v37  ;;  %v2047_v37 = vld [vmem:[%s4640_s1 + $0x440] sm:$0xff] }
  0x83   : > { %1514 = vmatprep.mubr.f32.mxu0 %v3665_v62  ;;  %2734 = vmatpush3.bf16.msra.mxu0 %v4281_v49  ;;  %v4324_v38 = vpack.c.bf16 %v2048_v11, %v2047_v37 }
  0x84   : > { %1032 = vmatmul.mubr.f32.gmra.mrb[34].mxu1 %v4744_v63  ;;  %2736 = vmatprep.subr.bf16.mxu0 %v4296_v17 }
  0x85   : > { %1036 = vmatprep.mubr.f32.mxu1 %v4226_v4 }
  0x86   : > { %1515 = vmatmul.mubr.f32.gmra.mrb[36].mxu0 %v4723_v27  ;;  %v2049_v27 = vld [vmem:[%s4640_s1 + $0x450] sm:$0xff] }
  0x87   : > { %1519 = vmatprep.mubr.f32.mxu0 %v4008_v52  ;;  %2738 = vmatpush3.bf16.msra.mxu0 %v4296_v17  ;;  %v2747_v52 = vpack.c.bf16 %v2050_v13, %v2049_v27 }
  0x88   : > { %1037 = vmatmul.mubr.f32.gmra.mrb[36].mxu1 %v4742_v54  ;;  %2740 = vmatprep.subr.bf16.mxu0 %v4310_v30 }
  0x89   : > { %1041 = vmatprep.mubr.f32.mxu1 %v4004_v44 }
  0x8a   : > { %1520 = vmatmul.mubr.f32.gmra.mrb[38].mxu0 %v4729_v33  ;;  %v2051_v33 = vld [vmem:[%s4640_s1 + $0x460] sm:$0xff] }
  0x8b   : > { %1524 = vmatprep.mubr.f32.mxu0 %v3799_v0  ;;  %2742 = vmatpush3.bf16.msra.mxu0 %v4310_v30  ;;  %v2751_v50 = vpack.c.bf16 %v2052_v59, %v2051_v33  ;;  %v4429_v33 = vld [vmem:[%s4641_s2] ss:$0 sm:$0xff] }
  0x8c   : > { %1042 = vmatmul.mubr.f32.gmra.mrb[38].mxu1 %v3668_v51  ;;  %2744 = vmatprep.subr.bf16.mxu0 %v4324_v38 }
  0x8d   : > { %1046 = vmatprep.mubr.f32.mxu1 %v4253_v26 }
  0x8e   : > { %1525 = vmatmul.mubr.f32.gmra.mrb[40].mxu0 %v4733_v41  ;;  %v2053_v41 = vld [vmem:[%s4640_s1 + $0x470] sm:$0xff] }
  0x8f   : > { %1529 = vmatprep.mubr.f32.mxu0 %v4050_v21  ;;  %2746 = vmatpush3.bf16.msra.mxu0 %v4324_v38  ;;  %v2755_v21 = vpack.c.bf16 %v2054_v2, %v2053_v41 }
  0x90   : > { %1047 = vmatmul.mubr.f32.gmra.mrb[40].mxu1 %v4745_v12  ;;  %2748 = vmatprep.subr.bf16.mxu0 %v2747_v52 }
  0x91   : > { %1051 = vmatprep.mubr.f32.mxu1 %v4046_v35 }
  0x92   : > { %1530 = vmatmul.mubr.f32.gmra.mrb[42].mxu0 %v4739_v56  ;;  %v4747_v56 = vld [vmem:[#allocation34_spill] sm:$0xff] }
  0x93   : > { %1534 = vmatprep.mubr.f32.mxu0 %v4158_v46  ;;  %2750 = vmatpush3.bf16.msra.mxu0 %v2747_v52 }
  0x94   : > { %1052 = vmatmul.mubr.f32.gmra.mrb[42].mxu1 %v3731_v19  ;;  %2752 = vmatprep.subr.bf16.mxu0 %v2751_v50 }
  0x95   : > { %1056 = vmatprep.mubr.f32.mxu1 %v4058_v6 }
  0x96   : > { %1535 = vmatmul.mubr.f32.gmra.mrb[44].mxu0 %v4734_v40  ;;  %v4750_v40 = vld [vmem:[#allocation26_spill] sm:$0xff] }
  0x97   : > { %1539 = vmatprep.mubr.f32.mxu0 %v4747_v56  ;;  %2754 = vmatpush3.bf16.msra.mxu0 %v2751_v50 }
  0x98   : > { %1057 = vmatmul.mubr.f32.gmra.mrb[44].mxu1 %v3994_v32  ;;  %2756 = vmatprep.subr.bf16.mxu0 %v2755_v21 }
  0x99   : > { %1061 = vmatprep.mubr.f32.mxu1 %v4748_v1 }
  0x9a   : > { %1540 = vmatmul.mubr.f32.gmra.mrb[46].mxu0 %v4744_v63  ;;  %v4752_v63 = vld [vmem:[#allocation28_spill] sm:$0xff] }
  0x9b   : > { %1544 = vmatprep.mubr.f32.mxu0 %v4226_v4  ;;  %2758 = vmatpush3.bf16.msra.mxu0 %v2755_v21 }
  0x9c   : > { %1062 = vmatmul.mubr.f32.gmra.mrb[46].mxu1 %v4012_v10 }
  0x9d   : > { %2487 = vmatprep.mubr.f32.mxu1 %v4749_v61 }
  0x9e   : > { %1545 = vmatmul.mubr.f32.gmra.mrb[48].mxu0 %v4742_v54  ;;  %v4757_v54 = vld [vmem:[#allocation24_spill] sm:$0xff] }
  0x9f   : > { %1549 = vmatprep.mubr.f32.mxu0 %v4101_v23  ;;  %v4754_v23 = vld [vmem:[#allocation30_spill] sm:$0xff] }
  0xa0   : > { %2488 = vmatmul.mubr.f32.vlgmr.msra.gmra.mrb[0].mxu1 %v4750_v40 }
  0xa1   : > { %2767 = vmatpush3.bf16.msra.mxu1 %v4106_v43  ;;  %2490 = vmatprep.mubr.f32.mxu1 %v4751_v45  ;;  %v4755_v43 = vld [vmem:[#allocation20_spill] sm:$0xff] }
  0xa2   : > { %2760 = vmatprep.subr.bf16.mxu1 %v4281_v49  ;;  %1550 = vmatmul.mubr.f32.gmra.mrb[50].mxu0 %v3668_v51  ;;  %v4756_v51 = vld [vmem:[#allocation31_spill] sm:$0xff] }
  0xa3   : > { %1554 = vmatprep.mubr.f32.mxu0 %v4253_v26 }
  0xa4   : > { %2491 = vmatmul.mubr.f32.gmra.mrb[2].mxu1 %v4752_v63 }
  0xa5   : > { %2768 = vmatpush3.bf16.msra.mxu1 %v4281_v49  ;;  %2493 = vmatprep.mubr.f32.mxu1 %v4753_v53  ;;  %v4761_v49 = vld [vmem:[#allocation29_spill] sm:$0xff] }
  0xa6   : > { %2761 = vmatprep.subr.bf16.mxu1 %v4296_v17  ;;  %1555 = vmatmul.mubr.f32.gmra.mrb[52].mxu0 %v4745_v12  ;;  %v4760_v12 = vld [vmem:[#allocation33_spill] sm:$0xff] }
  0xa7   : > { %1559 = vmatprep.mubr.f32.mxu0 %v4110_v3  ;;  %v4758_v3 = vld [vmem:[#allocation32_spill] sm:$0xff] }
  0xa8   : > { %2494 = vmatmul.mubr.f32.gmra.mrb[4].mxu1 %v4754_v23 }
  0xa9   : > { %2769 = vmatpush3.bf16.msra.mxu1 %v4296_v17  ;;  %2496 = vmatprep.mubr.f32.mxu1 %v4755_v43 }
  0xaa   : > { %2762 = vmatprep.subr.bf16.mxu1 %v4310_v30  ;;  %1560 = vmatmul.mubr.f32.gmra.mrb[54].mxu0 %v3731_v19  ;;  %v4759_v19 = vld [vmem:[#allocation27_spill] sm:$0xff] }
  0xab   : > { %1564 = vmatprep.mubr.f32.mxu0 %v4058_v6 }
  0xac   : > { %2497 = vmatmul.mubr.f32.gmra.mrb[6].mxu1 %v4756_v51 }
  0xad   : > { %2770 = vmatpush3.bf16.msra.mxu1 %v4310_v30  ;;  %2499 = vmatprep.mubr.f32.mxu1 %v4757_v54 }
  0xae   : > { %2763 = vmatprep.subr.bf16.mxu1 %v4324_v38  ;;  %1565 = vmatmul.mubr.f32.gmra.mrb[56].mxu0 %v3994_v32  ;;  %v1335_v32 = vrot.slane %v2945_v34, 2 }
  0xaf   : > { %1569 = vmatprep.mubr.f32.mxu0 %v4118_v24  ;;  %v4762_v24 = vld [vmem:[#allocation35_spill] sm:$0xff] }
  0xb0   : > { %2500 = vmatmul.mubr.f32.gmra.mrb[8].mxu1 %v4758_v3 }
  0xb1   : > { %2771 = vmatpush3.bf16.msra.mxu1 %v4324_v38  ;;  %2502 = vmatprep.mubr.f32.mxu1 %v4759_v19 }
  0xb2   : > { %2764 = vmatprep.subr.bf16.mxu1 %v2747_v52  ;;  %1570 = vmatmul.mubr.f32.gmra.mrb[58].mxu0 %v4012_v10  ;;  %v1337_v10 = vsel %vm299_vm1, %v1335_v32, %v3436_v58 }
  0xb3   : > { %1574 = vmatprep.mubr.f32.mxu0 %v4121_v25 }
  0xb4   : > { %2503 = vmatmul.mubr.f32.gmra.mrb[10].mxu1 %v4760_v12 }
  0xb5   : > { %2772 = vmatpush3.bf16.msra.mxu1 %v2747_v52  ;;  %2505 = vmatprep.mubr.f32.mxu1 %v4761_v49 }
  0xb6   : > { %2765 = vmatprep.subr.bf16.mxu1 %v2751_v50  ;;  %1575 = vmatmul.mubr.f32.gmra.mrb[60].mxu0 %v4087_v8  ;;  %v4763_v8 = vld [vmem:[#allocation8_spill] sm:$0xff] }
  0xb7   : > { %1579 = vmatprep.mubr.f32.mxu0 %v4147_v5 }
  0xb8   : > { %2506 = vmatmul.mubr.f32.gmra.mrb[12].mxu1 %v4762_v24 }
  0xb9   : > { %2773 = vmatpush3.bf16.msra.mxu1 %v2751_v50  ;;  %2508 = vmatprep.mubr.f32.mxu1 %v4129_v29 }
  0xba   : > { %2766 = vmatprep.subr.bf16.mxu1 %v2755_v21  ;;  %1580 = vmatmul.mubr.f32.gmra.mrb[62].mxu0 %v4090_v7 }
  0xbb   : > { %2543 = vmatprep.mubr.f32.mxu0 %v1337_v10 }
  0xbc   : > { %2509 = vmatmul.mubr.f32.gmra.mrb[14].mxu1 %v4150_v22 }
  0xbd   : > { %2774 = vmatpush3.bf16.msra.mxu1 %v2755_v21  ;;  %2555 = vmatprep.mubr.f32.mxu1 %v4759_v19 }
  0xbe   : > { %2544 = vmatmul.mubr.f32.vlgmr.msra.gmra.mrb[64].mxu0 %v4133_v20 }
  0xbf   : > { %2546 = vmatprep.mubr.f32.mxu0 %v4753_v53 }
  0xc0   : > { %2556 = vmatmul.mubr.f32.vlgmr.msra.gmra.mrb[8].mxu1 %v4763_v8 }
  0xc1   : > { %2558 = vmatprep.mubr.f32.mxu1 %v4761_v49 }
  0xc2   : > { %2547 = vmatmul.mubr.f32.gmra.mrb[66].mxu0 %v4168_v48 }
  0xc3   : > { %2549 = vmatprep.mubr.f32.mxu0 %v4755_v43 }
  0xc4   : > { %2559 = vmatmul.mubr.f32.gmra.mrb[10].mxu1 %v4172_v9 }
  0xc5   : > { %2561 = vmatprep.mubr.f32.mxu1 %v4129_v29 }
  0xc6   : > { %2550 = vmatmul.mubr.f32.gmra.mrb[68].mxu0 %v4178_v18 }
  0xc7   : > { %2552 = vmatprep.mubr.f32.mxu0 %v4757_v54 }
  0xc8   : > { %2562 = vmatmul.mubr.f32.gmra.mrb[12].mxu1 %v4183_v14 }
  0xc9   : > { %2564 = vmatprep.mubr.f32.mxu1 %v4197_v42 }
  0xca   : > { %2553 = vmatmul.mubr.f32.gmra.mrb[70].mxu0 %v4201_v60 }
  0xcc   : > { %2565 = vmatmul.mubr.f32.gmra.mrb[14].mxu1 %v4204_v55 }
 0x10f   : > { %v2095_v58 = vpop.f32.mrb[0].mxu0 }
 0x110   : > { %v2096_v7 = vpop.f32.mrb[1].mxu0 }
 0x111   : > { %v2097_v25 = vadd.f32 %v2096_v7, %v2095_v58 }
 0x113   : > { %v2098_v20 = vpop.f32.mrb[2].mxu0  ;;  %v2780_v56 = vadd.f32 %v2097_v25, %v4429_v33 }
 0x114   : > { %v2099_v5 = vpop.f32.mrb[3].mxu0 }
 0x115   : > { %v2100_v22 = vadd.f32 %v2099_v5, %v2098_v20 }
 0x117   : > { %v2101_v48 = vpop.f32.mrb[4].mxu0  ;;  %v2775_v51 = vadd.f32 %v2100_v22, %v4429_v33 }
 0x118   : > { %v2102_v29 = vpop.f32.mrb[5].mxu0 }
 0x119   : > { %v2103_v9 = vadd.f32 %v2102_v29, %v2101_v48 }
 0x11b   : > { %v2104_v18 = vpop.f32.mrb[6].mxu0  ;;  %v2790_v24 = vadd.f32 %v2103_v9, %v4429_v33 }
 0x11c   : > { %v2105_v17 = vpop.f32.mrb[7].mxu0 }
 0x11d   : > { %v2106_v14 = vadd.f32 %v2105_v17, %v2104_v18 }
 0x11f   : > { %v2107_v31 = vpop.f32.mrb[8].mxu0  ;;  %v2785_v22 = vadd.f32 %v2106_v14, %v4429_v33 }
 0x120   : > { %v2108_v47 = vpop.f32.mrb[9].mxu0 }
 0x121   : > { %v2109_v30 = vadd.f32 %v2108_v47, %v2107_v31 }
 0x123   : > { %v2110_v42 = vpop.f32.mrb[10].mxu0 }
 0x124   : > { %v2111_v37 = vpop.f32.mrb[11].mxu0 }
 0x125   : > { %v2112_v60 = vadd.f32 %v2111_v37, %v2110_v42  ;;  %v2800_v42 = vadd.f32 %v2109_v30, %v4429_v33 }
 0x128   : > { %v2113_v11 = vpop.f32.mrb[12].mxu0 }
 0x129   : > { %v2114_v55 = vpop.f32.mrb[13].mxu0 }
 0x12a   : > { %v2115_v38 = vadd.f32 %v2114_v55, %v2113_v11 }
 0x12c   : > { %v2116_v27 = vpop.f32.mrb[14].mxu0 }
 0x12d   : > { %v2117_v13 = vpop.f32.mrb[15].mxu0 }
 0x12e   : > { %v4424_v52 = vadd.f32 %v2117_v13, %v2116_v27 }
 0x130   : > { %v2119_v59 = vpop.f32.mrb[16].mxu0 }
 0x131   : > { %v2120_v41 = vpop.f32.mrb[17].mxu0 }
 0x132   : > { %v4431_v2 = vadd.f32 %v2120_v41, %v2119_v59 }
 0x133   : > { %v2207_v50 = vpop.f32.mrb[16].mxu1 }
 0x134   : > { %v2208_v21 = vpop.f32.mrb[17].mxu1 }
 0x135   : > { %v2209_v61 = vadd.f32 %v2208_v21, %v2207_v50  ;;  %v2122_v40 = vpop.f32.mrb[18].mxu0  ;;  %v2795_v50 = vadd.f32 %v2112_v60, %v4429_v33 }
 0x136   : > { %v2123_v63 = vpop.f32.mrb[19].mxu0 }
 0x137   : > { %v2210_v45 = vpop.f32.mrb[18].mxu1  ;;  %v4434_v53 = vadd.f32 %v2780_v56, %v2209_v61  ;;  %v4436_v23 = vadd.f32 %v2123_v63, %v2122_v40  ;;  %v2810_v63 = vadd.f32 %v2115_v38, %v4429_v33 }
 0x138   : > { %v2211_v43 = vpop.f32.mrb[19].mxu1 }
 0x139   : > { %v2212_v54 = vadd.f32 %v2211_v43, %v2210_v45  ;;  %v2125_v3 = vpop.f32.mrb[20].mxu0 }
 0x13a   : > { %v2126_v12 = vpop.f32.mrb[21].mxu0 }
 0x13b   : > { %v2213_v19 = vpop.f32.mrb[20].mxu1  ;;  %v4439_v49 = vadd.f32 %v2775_v51, %v2212_v54  ;;  %v4441_v34 = vadd.f32 %v2126_v12, %v2125_v3 }
 0x13c   : > { %v2214_v32 = vpop.f32.mrb[21].mxu1 }
 0x13d   : > { %v2215_v10 = vadd.f32 %v2214_v32, %v2213_v19  ;;  %v2128_v8 = vpop.f32.mrb[22].mxu0  ;;  %v2805_v32 = vadd.f32 %v4424_v52, %v4429_v33 }
 0x13e   : > { %v2129_v7 = vpop.f32.mrb[23].mxu0 }
 0x13f   : > { %v2216_v58 = vpop.f32.mrb[22].mxu1  ;;  %v4444_v25 = vadd.f32 %v2790_v24, %v2215_v10  ;;  %v4446_v20 = vadd.f32 %v2129_v7, %v2128_v8 }
 0x140   : > { %v2217_v5 = vpop.f32.mrb[23].mxu1 }
 0x141   : > { %v2218_v48 = vadd.f32 %v2217_v5, %v2216_v58  ;;  %v2131_v29 = vpop.f32.mrb[24].mxu0 }
 0x142   : > { %v2132_v17 = vpop.f32.mrb[25].mxu0 }
 0x143   : > { %v2219_v18 = vpop.f32.mrb[24].mxu1  ;;  %v4449_v31 = vadd.f32 %v2785_v22, %v2218_v48  ;;  %v4451_v47 = vadd.f32 %v2132_v17, %v2131_v29  ;;  %v2819_v22 = vadd.f32 %v4431_v2, %v4429_v33  ;;  %v2827_v2 = vadd.f32 %v4441_v34, %v4429_v33 }
 0x144   : > { %v2220_v9 = vpop.f32.mrb[25].mxu1 }
 0x145   : > { %v2221_v37 = vadd.f32 %v2220_v9, %v2219_v18  ;;  %v2134_v11 = vpop.f32.mrb[26].mxu0  ;;  %v2835_v34 = vadd.f32 %v4451_v47, %v4429_v33 }
 0x146   : > { %v2135_v27 = vpop.f32.mrb[27].mxu0 }
 0x147   : > { %v2222_v55 = vpop.f32.mrb[26].mxu1  ;;  %v4454_v13 = vadd.f32 %v2800_v42, %v2221_v37  ;;  %v4456_v59 = vadd.f32 %v2135_v27, %v2134_v11  ;;  %v2815_v37 = vadd.f32 %v4436_v23, %v4429_v33 }
 0x148   : > { %v2223_v14 = vpop.f32.mrb[27].mxu1 }
 0x149   : > { %v2224_v41 = vadd.f32 %v2223_v14, %v2222_v55  ;;  %v2137_v21 = vpop.f32.mrb[28].mxu0 }
 0x14a   : > { %v2138_v61 = vpop.f32.mrb[29].mxu0 }
 0x14b   : > { %v2225_v56 = vpop.f32.mrb[28].mxu1  ;;  %v4459_v40 = vadd.f32 %v2795_v50, %v2224_v41  ;;  %v4461_v45 = vadd.f32 %v2138_v61, %v2137_v21 }
 0x14c   : > { %v2226_v30 = vpop.f32.mrb[29].mxu1 }
 0x14d   : > { %v2227_v43 = vadd.f32 %v2226_v30, %v2225_v56  ;;  %v2140_v51 = vpop.f32.mrb[30].mxu0  ;;  %v2843_v47 = vadd.f32 %v4461_v45, %v4429_v33 }
 0x14e   : > { %v2141_v3 = vpop.f32.mrb[31].mxu0 }
 0x14f   : > { %v2228_v54 = vpop.f32.mrb[30].mxu1  ;;  %v4464_v19 = vadd.f32 %v2810_v63, %v2227_v43  ;;  %v4466_v12 = vadd.f32 %v2141_v3, %v2140_v51 }
 0x150   : > { %v2229_v60 = vpop.f32.mrb[31].mxu1 }
 0x151   : > { %v2230_v24 = vadd.f32 %v2229_v60, %v2228_v54  ;;  %v2319_v10 = vpop.f32.mrb[32].mxu0  ;;  %v2823_v54 = vadd.f32 %v4446_v20, %v4429_v33  ;;  %v2831_v20 = vadd.f32 %v4456_v59, %v4429_v33  ;;  %v2839_v59 = vadd.f32 %v4466_v12, %v4429_v33 }
 0x152   : > { %v2320_v58 = vpop.f32.mrb[33].mxu0 }
 0x153   : > { %v2231_v8 = vpop.f32.mrb[32].mxu1  ;;  %v4470_v7 = vadd.f32 %v2805_v32, %v2230_v24  ;;  %v4472_v38 = vadd.f32 %v2320_v58, %v2319_v10 }
 0x154   : > { %v2232_v5 = vpop.f32.mrb[33].mxu1 }
 0x155   : > { %v2233_v48 = vadd.f32 %v2232_v5, %v2231_v8  ;;  %v2322_v29 = vpop.f32.mrb[34].mxu0 }
 0x156   : > { %v2323_v9 = vpop.f32.mrb[35].mxu0 }
 0x157   : > { %v4476_v18 = vadd.f32 %v2819_v22, %v2233_v48  ;;  %v2234_v17 = vpop.f32.mrb[34].mxu1  ;;  %v2324_v52 = vadd.f32 %v2323_v9, %v2322_v29 }
 0x158   : > { %v2235_v42 = vpop.f32.mrb[35].mxu1 }
 0x159   : > { %v2236_v11 = vadd.f32 %v2235_v42, %v2234_v17  ;;  %v2325_v55 = vpop.f32.mrb[36].mxu0 }
 0x15a   : > { %v2326_v50 = vpop.f32.mrb[37].mxu0 }
 0x15b   : > { %v4480_v27 = vadd.f32 %v2815_v37, %v2236_v11  ;;  %v2237_v14 = vpop.f32.mrb[36].mxu1  ;;  %v4482_v21 = vadd.f32 %v2326_v50, %v2325_v55 }
 0x15c   : > { %v2238_v41 = vpop.f32.mrb[37].mxu1 }
 0x15d   : > { %v2239_v56 = vadd.f32 %v2238_v41, %v2237_v14  ;;  %v2328_v61 = vpop.f32.mrb[38].mxu0 }
 0x15e   : > { %v2329_v43 = vpop.f32.mrb[39].mxu0 }
 0x15f   : > { %v4486_v30 = vadd.f32 %v2827_v2, %v2239_v56  ;;  %v2240_v63 = vpop.f32.mrb[38].mxu1  ;;  %v2330_v23 = vadd.f32 %v2329_v43, %v2328_v61 }
 0x160   : > { %v2241_v51 = vpop.f32.mrb[39].mxu1 }
 0x161   : > { %v2242_v3 = vadd.f32 %v2241_v51, %v2240_v63  ;;  %v2331_v60 = vpop.f32.mrb[40].mxu0 }
 0x162   : > { %v2332_v10 = vpop.f32.mrb[41].mxu0 }
 0x163   : > { %v4490_v32 = vadd.f32 %v2823_v54, %v2242_v3  ;;  %v2243_v24 = vpop.f32.mrb[40].mxu1  ;;  %v2333_v58 = vadd.f32 %v2332_v10, %v2331_v60 }
 0x164   : > { %v2244_v8 = vpop.f32.mrb[41].mxu1 }
 0x165   : > { %v2245_v5 = vadd.f32 %v2244_v8, %v2243_v24  ;;  %v2334_v22 = vpop.f32.mrb[42].mxu0 }
 0x166   : > { %v2335_v17 = vpop.f32.mrb[43].mxu0 }
 0x167   : > { %v4494_v48 = vadd.f32 %v2835_v34, %v2245_v5  ;;  %v2246_v29 = vpop.f32.mrb[42].mxu1  ;;  %v2336_v42 = vadd.f32 %v2335_v17, %v2334_v22 }
 0x168   : > { %v2247_v9 = vpop.f32.mrb[43].mxu1 }
 0x169   : > { %v2248_v37 = vadd.f32 %v2247_v9, %v2246_v29  ;;  %v2337_v11 = vpop.f32.mrb[44].mxu0 }
 0x16a   : > { %v2338_v50 = vpop.f32.mrb[45].mxu0 }
 0x16b   : > { %v4498_v55 = vadd.f32 %v2831_v20, %v2248_v37  ;;  %v2249_v14 = vpop.f32.mrb[44].mxu1  ;;  %v2339_v2 = vadd.f32 %v2338_v50, %v2337_v11 }
 0x16c   : > { %v2250_v41 = vpop.f32.mrb[45].mxu1 }
 0x16d   : > { %v2251_v56 = vadd.f32 %v2250_v41, %v2249_v14  ;;  %v2340_v61 = vpop.f32.mrb[46].mxu0 }
 0x16e   : > { %v2341_v51 = vpop.f32.mrb[47].mxu0 }
 0x16f   : > { %v2844_v63 = vadd.f32 %v2843_v47, %v2251_v56  ;;  %v2252_v43 = vpop.f32.mrb[46].mxu1  ;;  %v2342_v3 = vadd.f32 %v2341_v51, %v2340_v61 }
 0x170   : > { %v2253_v54 = vpop.f32.mrb[47].mxu1 }
 0x171   : > { %v2254_v60 = vadd.f32 %v2253_v54, %v2252_v43  ;;  %v2343_v24 = vpop.f32.mrb[48].mxu0 }
 0x172   : > { %v2344_v34 = vpop.f32.mrb[49].mxu0 }
 0x173   : > { %v2840_v10 = vadd.f32 %v2839_v59, %v2254_v60  ;;  %v2489_v8 = vpop.f32.mrb[0].mxu1  ;;  %v2345_v29 = vadd.f32 %v2344_v34, %v2343_v24 }
 0x174   : > { %v2777_v5 = vadd.f32 %v4439_v49, %v2489_v8  ;;  %v1133_v22 = vpop.f32.mrb[1].mxu1 }
 0x175   : > { %v2782_v45 = vadd.f32 %v4434_v53, %v1133_v22  ;;  %v2346_v17 = vpop.f32.mrb[50].mxu0  ;;  %v2821_v20 = vadd.f32 %v4476_v18, %v2345_v29 }
 0x176   : > { %v2778_v9 = vadd.f32 %v2777_v5, %v2324_v52  ;;  %v2347_v11 = vpop.f32.mrb[51].mxu0 }
 0x177   : > { %v2492_v37 = vpop.f32.mrb[2].mxu1  ;;  %v2783_v14 = vadd.f32 %v2782_v45, %v4472_v38  ;;  %v2348_v50 = vadd.f32 %v2347_v11, %v2346_v17 }
 0x178   : > { %v2787_v33 = vadd.f32 %v4449_v31, %v2492_v37  ;;  %v1143_v12 = vpop.f32.mrb[3].mxu1 }
 0x179   : > { %v2792_v41 = vadd.f32 %v4444_v25, %v1143_v12  ;;  %v2349_v47 = vpop.f32.mrb[52].mxu0  ;;  %v2817_v49 = vadd.f32 %v4480_v27, %v2348_v50 }
 0x17a   : > { %v2788_v56 = vadd.f32 %v2787_v33, %v2330_v23  ;;  %v2350_v53 = vpop.f32.mrb[53].mxu0 }
 0x17b   : > { %v2495_v61 = vpop.f32.mrb[4].mxu1  ;;  %v2793_v52 = vadd.f32 %v2792_v41, %v4482_v21  ;;  %v2351_v51 = vadd.f32 %v2350_v53, %v2349_v47 }
 0x17c   : > { %v2797_v18 = vadd.f32 %v4459_v40, %v2495_v61  ;;  %v1153_v43 = vpop.f32.mrb[5].mxu1 }
 0x17d   : > { %v2802_v38 = vadd.f32 %v4454_v13, %v1153_v43  ;;  %v2352_v54 = vpop.f32.mrb[54].mxu0  ;;  %v2829_v31 = vadd.f32 %v4486_v30, %v2351_v51  ;;  %v4764_v43 = vld [vmem:[#allocation10_spill] sm:$0xff] }
 0x17e   : > { %v4515_v59 = vadd.f32 %v2797_v18, %v2336_v42  ;;  %v2353_v60 = vpop.f32.mrb[55].mxu0 }
 0x17f   : > { %v2498_v25 = vpop.f32.mrb[6].mxu1  ;;  %v4517_v24 = vadd.f32 %v2802_v38, %v2333_v58  ;;  %v2354_v8 = vadd.f32 %v2353_v60, %v2352_v54 }
 0x180   : > { %v2807_v27 = vadd.f32 %v4470_v7, %v2498_v25  ;;  %v1163_v23 = vpop.f32.mrb[7].mxu1 }
 0x181   : > { %v2812_v21 = vadd.f32 %v4464_v19, %v1163_v23  ;;  %v2355_v40 = vpop.f32.mrb[56].mxu0  ;;  %v2825_v34 = vadd.f32 %v4490_v32, %v2354_v8 }
 0x182   : > { %v4522_v5 = vadd.f32 %v2807_v27, %v2342_v3  ;;  %v2356_v13 = vpop.f32.mrb[57].mxu0 }
 0x183   : > { %v4524_v30 = vadd.f32 %v2812_v21, %v2339_v2  ;;  %v2357_v42 = vadd.f32 %v2356_v13, %v2355_v40 }
 0x185   : > { %v2358_v22 = vpop.f32.mrb[58].mxu0  ;;  %v2837_v58 = vadd.f32 %v4494_v48, %v2357_v42 }
 0x186   : > { %v2359_v29 = vpop.f32.mrb[59].mxu0 }
 0x187   : > { %v2360_v7 = vadd.f32 %v2359_v29, %v2358_v22 }
 0x189   : > { %v2361_v45 = vpop.f32.mrb[60].mxu0  ;;  %v2833_v17 = vadd.f32 %v4498_v55, %v2360_v7 }
 0x18a   : > { %v2362_v19 = vpop.f32.mrb[61].mxu0 }
 0x18b   : > { %v2363_v37 = vadd.f32 %v2362_v19, %v2361_v45 }
 0x18d   : > { %v2364_v11 = vpop.f32.mrb[62].mxu0  ;;  %v4528_v32 = vadd.f32 %v2844_v63, %v2363_v37 }
 0x18e   : > { %v2365_v3 = vpop.f32.mrb[63].mxu0 }
 0x18f   : > { %v2366_v33 = vadd.f32 %v2365_v3, %v2364_v11 }
 0x191   : > { %v2545_v2 = vpop.f32.mrb[64].mxu0  ;;  %v4531_v12 = vadd.f32 %v2840_v10, %v2366_v33 }
 0x192   : > { %v2779_v50 = vadd.f32 %v2778_v9, %v2545_v2  ;;  %v1651_v41 = vpop.f32.mrb[65].mxu0 }
 0x193   : > { %v2557_v48 = vpop.f32.mrb[8].mxu1  ;;  %v2784_v61 = vadd.f32 %v2783_v14, %v1651_v41 }
 0x194   : > { %v2818_v47 = vadd.f32 %v2817_v49, %v2557_v48  ;;  %v1691_v53 = vpop.f32.mrb[9].mxu1  ;;  %v1747_v55 = vadd.f32 %v2779_v50, %v3987_v36 }
 0x195   : > { %v2822_v18 = vadd.f32 %v2821_v20, %v1691_v53  ;;  %v1746_v51 = vadd.f32 %v2784_v61, %v4764_v43  ;;  %v2548_v38 = vpop.f32.mrb[66].mxu0 }
 0x196   : > { %v1755_v63 = vadd.f32 %v2818_v47, %v3977_v15  ;;  %v1763_v54 = vmax.f32 %v1747_v55, 0.0  ;;  %v2789_v25 = vadd.f32 %v2788_v56, %v2548_v38  ;;  %v1661_v27 = vpop.f32.mrb[67].mxu0 }
 0x197   : > { %v1754_v10 = vadd.f32 %v2822_v18, %v4158_v46  ;;  %v2560_v60 = vpop.f32.mrb[10].mxu1  ;;  %v1762_v23 = vmax.f32 %v1746_v51, 0.0  ;;  %v2794_v49 = vadd.f32 %v2793_v52, %v1661_v27 }
 0x198   : > { %v1771_v9 = vmax.f32 %v1755_v63, 0.0  ;;  %v2826_v8 = vadd.f32 %v2825_v34, %v2560_v60  ;;  %v1701_v14 = vpop.f32.mrb[11].mxu1  ;;  %1779 = vst [vmem:[%s4539_s24 + $0x8] sm:$0xff] %v1763_v54  ;;  %v1749_v36 = vadd.f32 %v2789_v25, %v4213_v16 }
 0x199   : > { %v1770_v15 = vmax.f32 %v1754_v10, 0.0  ;;  %v2830_v46 = vadd.f32 %v2829_v31, %v1701_v14  ;;  %1778 = vst [vmem:[%s4539_s24] sm:$0xff] %v1762_v23  ;;  %v1748_v56 = vadd.f32 %v2794_v49, %v4741_v39  ;;  %v2551_v52 = vpop.f32.mrb[68].mxu0 }
 0x19a   : > { %1787 = vst [vmem:[%s4539_s24 + $0x48] sm:$0xff] %v1771_v9  ;;  %v1757_v20 = vadd.f32 %v2826_v8, %v4004_v44  ;;  %v1765_v21 = vmax.f32 %v1749_v36, 0.0  ;;  %v2799_v34 = vadd.f32 %v4515_v59, %v2551_v52  ;;  %v1671_v42 = vpop.f32.mrb[69].mxu0 }
 0x19b   : > { %1786 = vst [vmem:[%s4539_s24 + $0x40] sm:$0xff] %v1770_v15  ;;  %v1756_v40 = vadd.f32 %v2830_v46, %v4226_v4  ;;  %v2563_v13 = vpop.f32.mrb[12].mxu1  ;;  %v1764_v31 = vmax.f32 %v1748_v56, 0.0  ;;  %v2804_v22 = vadd.f32 %v4517_v24, %v1671_v42 }
 0x19c   : > { %v1773_v16 = vmax.f32 %v1757_v20, 0.0  ;;  %v2834_v44 = vadd.f32 %v2833_v17, %v2563_v13  ;;  %v1711_v39 = vpop.f32.mrb[13].mxu1  ;;  %1781 = vst [vmem:[%s4539_s24 + $0x18] sm:$0xff] %v1765_v21  ;;  %v1751_v7 = vadd.f32 %v2799_v34, %v3906_v28 }
 0x19d   : > { %v1772_v29 = vmax.f32 %v1756_v40, 0.0  ;;  %v2838_v45 = vadd.f32 %v2837_v58, %v1711_v39  ;;  %1780 = vst [vmem:[%s4539_s24 + $0x10] sm:$0xff] %v1764_v31  ;;  %v1750_v59 = vadd.f32 %v2804_v22, %v3665_v62  ;;  %v2554_v19 = vpop.f32.mrb[70].mxu0 }
 0x19e   : > { %1789 = vst [vmem:[%s4539_s24 + $0x58] sm:$0xff] %v1773_v16  ;;  %v1759_v4 = vadd.f32 %v2834_v44, %v4046_v35  ;;  %v1767_v17 = vmax.f32 %v1751_v7, 0.0  ;;  %v2809_v37 = vadd.f32 %v4522_v5, %v2554_v19  ;;  %v1681_v58 = vpop.f32.mrb[71].mxu0 }
 0x19f   : > { %1788 = vst [vmem:[%s4539_s24 + $0x50] sm:$0xff] %v1772_v29  ;;  %v1758_v24 = vadd.f32 %v2838_v45, %v4253_v26  ;;  %v2566_v28 = vpop.f32.mrb[14].mxu1  ;;  %v1766_v3 = vmax.f32 %v1750_v59, 0.0  ;;  %v2814_v62 = vadd.f32 %v4524_v30, %v1681_v58 }
 0x1a0   : > { %v1775_v11 = vmax.f32 %v1759_v4, 0.0  ;;  %v2842_v35 = vadd.f32 %v4531_v12, %v2566_v28  ;;  %v1721_v33 = vpop.f32.mrb[15].mxu1  ;;  %1783 = vst [vmem:[%s4539_s24 + $0x28] sm:$0xff] %v1767_v17  ;;  %v1753_v50 = vadd.f32 %v2809_v37, %v3933_v57 }
 0x1a1   : > { %v1774_v2 = vmax.f32 %v1758_v24, 0.0  ;;  %v2846_v26 = vadd.f32 %v4528_v32, %v1721_v33  ;;  %1782 = vst [vmem:[%s4539_s24 + $0x20] sm:$0xff] %v1766_v3  ;;  %v1752_v30 = vadd.f32 %v2814_v62, %v3799_v0 }
 0x1a2   : > { %1791 = vst [vmem:[%s4539_s24 + $0x68] sm:$0xff] %v1775_v11  ;;  %v1761_v5 = vadd.f32 %v2842_v35, %v4748_v1  ;;  %v1769_v12 = vmax.f32 %v1753_v50, 0.0 }
 0x1a3   : > { %1790 = vst [vmem:[%s4539_s24 + $0x60] sm:$0xff] %v1774_v2  ;;  %v1760_v48 = vadd.f32 %v2846_v26, %v4058_v6  ;;  %v1768_v41 = vmax.f32 %v1752_v30, 0.0 }
 0x1a4   : > { %v1777_v57 = vmax.f32 %v1761_v5, 0.0  ;;  %1785 = vst [vmem:[%s4539_s24 + $0x38] sm:$0xff] %v1769_v12 }
 0x1a5   : > { %v1776_v1 = vmax.f32 %v1760_v48, 0.0  ;;  %1784 = vst [vmem:[%s4539_s24 + $0x30] sm:$0xff] %v1768_v41 }
 0x1a6   : > { %1793 = vst [vmem:[%s4539_s24 + $0x78] sm:$0xff] %v1777_v57 }
 0x1a7   : > { %1792 = vst [vmem:[%s4539_s24 + $0x70] sm:$0xff] %v1776_v1 }
 0x1a8   : > { %2959 = shalt.err (!%p2956_p6)
}
 0x1a9   : > { %s2960_s8 = scalar_lea.hbm %s4577_s6, 2048  ;;  %s2964_s27 = scalar_lea.hbm %s4642_s3, 8192 }
 0x1aa   : > { %p2961_p7 = scmp.ne.s32.totalorder %s4577_s6, %s2960_s8  ;;  %p2965_p11 = scmp.lt.u32.totalorder %s4577_s6, %s4642_s3 }
 0x1ab   : > { %p2966_p12 = scmp.lt.u32.totalorder %s2964_s27, %s2960_s8  ;;  %p2968_p0 = scmp.lt.u32.totalorder %s2960_s8, %s4577_s6 }
 0x1ac   : > { %p2962_p9 = pnand %p2961_p7, %p3116_p3 }
 0x1ad   : > { %p2967_p13 = por %p2966_p12, %p2965_p11 }
 0x1ae   : > { %p2963_p10 = pneg %p2962_p9 }
 0x1af   : > { %p2969_p1 = por %p2968_p0, %p2967_p13 }
 0x1b1   : > { %p2970_p2 = pnand %p2969_p1, %p2963_p10 }
 0x1b3   : > { %2973 = shalt.err (!%p2970_p2)
}
 0x1b4   : > { %s3043_s16 = smov 128   ;;  %s3044_s29 = smov 8  }
 0x1b5   : > { %2872 = dma.vmem_to_hbm [thread:$0]  (%p3116_p3), %s4579_s4, 2048, %s4577_s6, %s4587_s10, %s3043_s16, %s3043_s16, %s3044_s29  }
 0x1b6 PF: > { %p2878_p4 = scmp.ge.s32.totalorder %s3040_s19, 2  ;;  %s1826_s5 = sand.u32 1, %s3012_s12  }
 0x1b7   : > { %s1827_s11 = scalar_lea.sflag [#allocation3], %s1826_s5 }
 0x1b8   : > { %p2875_p5 = pnand %p2878_p4, %p3125_p8 }
 0x1ba   : > { %3007 = dma.done.wait (!%p2875_p5), %s1827_s11, 2048  }
 0x1bb   : > { %3009 = vsyncadd (!%p2875_p5), %s1827_s11, 4294965248  ;;  %s16_s19 = sadd.s32 1, %s3040_s19   ;;  %s4765_s12 = smov %s3016_s13 }
 0x1bc   : > { %p13_p6 = scmp.ge.s32.totalorder %s16_s19, 6   ;;  %s4766_s13 = smov %s3020_s14 }
 0x1bd   : > { %s4767_s14 = smov %s3134_s30  ;;  %s4768_s15 = smov %s3032_s17 }
 0x1be   : > { %s4769_s16 = smov %s3036_s18  ;;  %s4770_s17 = smov %s4773_s22 }
 0x1bf   : > { %s4771_s18 = smov %s4777_s23  ;;  %15 = sbr.rel (!%p13_p6) target bundleno = 5 (0x5), region = 72 }
 0x1c6   :  { %1832 = vsyncpa [#allocation3], 1 }
 0x1c7   :  { %1834 = vsyncpa [#allocation3 + $0x1], 1 }

</bundles_post_ra>
